<compile_context>
chip_gen: v6e
topology: v6e:2x2x1
jax: 0.10.0
libtpu: 0.0.40
codegen_flags: <defaults>
</compile_context>

<pallas_src>
import functools

import jax
import jax.numpy as jnp
from jax.experimental import pallas as pl
from jax.experimental.pallas import tpu as pltpu

ACT_DTYPE = jnp.bfloat16     # intermediate feature-map dtype (accumulation stays f32)


def _round_up(v, m):
    return ((v + m - 1) // m) * m


def _pick_m_tile(M):
    """Row-tile for the matmul. Prefer no padding; keep <= 512."""
    m8 = _round_up(M, 8)
    if m8 <= 512:
        return m8, m8
    for c in (512, 256, 128):
        if m8 % c == 0:
            return c, m8
    return 128, _round_up(M, 128)


def _pick_tile_128(dim, cap):
    """Largest lane-aligned tile (multiple of 128) dividing the padded dim; <= cap."""
    p = _round_up(dim, 128)
    c = (min(cap, p) // 128) * 128
    while c >= 128:
        if p % c == 0:
            return c, p
        c -= 128
    return 128, p


def _pick_c_tile(C, cap=512):
    """Channel tile for the fused conv: 128-multiple divisor of C, else full C."""
    if C % 128 == 0:
        t = (min(cap, C) // 128) * 128
        while t >= 128:
            if C % t == 0:
                return t
            t -= 128
    return C


# ------------------------------------------------------------------ Pallas kernels

def _mm_kernel_scratch(a_ref, b_ref, bias_ref, o_ref, acc_ref, *, act, slope):
    """K-tiled matmul, f32 VMEM accumulator, fused bias + activation, bf16 output."""
    k = pl.program_id(2)

    @pl.when(k == 0)
    def _():
        acc_ref[...] = jnp.zeros_like(acc_ref)

    acc_ref[...] += jnp.dot(a_ref[...], b_ref[...],
                            preferred_element_type=jnp.float32)

    @pl.when(k == pl.num_programs(2) - 1)
    def _():
        acc = acc_ref[...] + bias_ref[...]
        if act == "relu":
            acc = jnp.maximum(acc, 0.0)
        elif act == "leaky":
            acc = jnp.where(acc >= 0.0, acc, slope * acc)
        o_ref[...] = acc.astype(o_ref.dtype)


def _mm_kernel_f32acc(a_ref, b_ref, bias_ref, o_ref, *, act, slope):
    """K-tiled matmul accumulating directly into the resident f32 output block."""
    k = pl.program_id(2)

    @pl.when(k == 0)
    def _():
        o_ref[...] = jnp.zeros_like(o_ref)

    o_ref[...] += jnp.dot(a_ref[...], b_ref[...],
                          preferred_element_type=jnp.float32)

    @pl.when(k == pl.num_programs(2) - 1)
    def _():
        acc = o_ref[...] + bias_ref[...]
        if act == "relu":
            acc = jnp.maximum(acc, 0.0)
        elif act == "leaky":
            acc = jnp.where(acc >= 0.0, acc, slope * acc)
        o_ref[...] = acc


def matmul_bias_act(a, b, bias=None, act="none", slope=0.1, out_dtype=None):
    """(M,K) @ (K,N) + bias, optional fused ReLU / LeakyReLU. bf16 operands, f32 acc."""
    if out_dtype is None:
        out_dtype = ACT_DTYPE
    M, K = a.shape
    _, N = b.shape
    TM, Mp = _pick_m_tile(M)
    TN, Np = _pick_tile_128(N, 512)
    TK, Kp = _pick_tile_128(K, 1024)

    if a.dtype != jnp.bfloat16:
        a = a.astype(jnp.bfloat16)
    if b.dtype != jnp.bfloat16:
        b = b.astype(jnp.bfloat16)
    if (Mp, Kp) != (M, K):
        a = jnp.pad(a, ((0, Mp - M), (0, Kp - K)))
    if (Kp, Np) != (K, N):
        b = jnp.pad(b, ((0, Kp - K), (0, Np - N)))

    if bias is None:
        bias = jnp.zeros((N,), jnp.float32)
    biasp = bias.astype(jnp.float32).reshape(1, N)
    if Np != N:
        biasp = jnp.pad(biasp, ((0, 0), (0, Np - N)))

    grid = (Mp // TM, Np // TN, Kp // TK)
    in_specs = [
        pl.BlockSpec((TM, TK), lambda i, j, k: (i, k)),
        pl.BlockSpec((TK, TN), lambda i, j, k: (k, j)),
        pl.BlockSpec((1, TN), lambda i, j, k: (0, j)),
    ]
    out_specs = pl.BlockSpec((TM, TN), lambda i, j, k: (i, j))
    cp = pltpu.CompilerParams(
        dimension_semantics=("parallel", "parallel", "arbitrary"))

    if jnp.dtype(out_dtype) == jnp.dtype(jnp.float32):
        out = pl.pallas_call(
            functools.partial(_mm_kernel_f32acc, act=act, slope=slope),
            out_shape=jax.ShapeDtypeStruct((Mp, Np), jnp.float32),
            grid=grid, in_specs=in_specs, out_specs=out_specs,
            compiler_params=cp,
        )(a, b, biasp)
    else:
        out = pl.pallas_call(
            functools.partial(_mm_kernel_scratch, act=act, slope=slope),
            out_shape=jax.ShapeDtypeStruct((Mp, Np), out_dtype),
            grid=grid, in_specs=in_specs, out_specs=out_specs,
            scratch_shapes=[pltpu.VMEM((TM, TN), jnp.float32)],
            compiler_params=cp,
        )(a, b, biasp)
    if (Mp, Np) != (M, N):
        out = out[:M, :N]
    return out


def _conv_s1_kernel(x_ref, w_ref, bias_ref, o_ref, acc_ref, *, kh, kw, act, slope):
    """Fused stride-1 'same' conv: builds the kh*kw taps from one padded spatial
    block in VMEM and accumulates them on the MXU (no im2col materialization)."""
    k = pl.program_id(2)

    @pl.when(k == 0)
    def _():
        acc_ref[...] = jnp.zeros_like(acc_ref)

    oh, ow = o_ref.shape[1], o_ref.shape[2]
    x = x_ref[0]                                   # (Hp, Wp, TCin) bf16
    tcin = x.shape[-1]
    acc = acc_ref[...]
    for a in range(kh):
        for b in range(kw):
            xs = x[a:a + oh, b:b + ow, :].reshape(oh * ow, tcin)
            acc = acc + jnp.dot(xs, w_ref[a, b],
                                preferred_element_type=jnp.float32)
    acc_ref[...] = acc

    @pl.when(k == pl.num_programs(2) - 1)
    def _():
        res = acc_ref[...] + bias_ref[...]
        if act == "relu":
            res = jnp.maximum(res, 0.0)
        elif act == "leaky":
            res = jnp.where(res >= 0.0, res, slope * res)
        o_ref[...] = res.reshape(o_ref.shape).astype(o_ref.dtype)


def _conv2d_s1_fused(x, w, b, act, out_dtype):
    """Fused stride-1 same-padding conv. Returns None if the per-block VMEM
    footprint would exceed a conservative budget (fallback to im2col path)."""
    N, H, W, Cin = x.shape
    kh, kw, _, Cout = w.shape
    ph = (kh - 1) // 2
    Hp, Wp = H + 2 * ph, W + 2 * ph
    TCin = _pick_c_tile(Cin)
    TCout = _pick_c_tile(Cout)

    x_blk = Hp * Wp * TCin * 2
    w_blk = kh * kw * TCin * TCout * 2
    o_blk = H * W * TCout * (2 if jnp.dtype(out_dtype) == jnp.dtype(jnp.bfloat16) else 4)
    acc_blk = H * W * TCout * 4
    if 2 * (x_blk + w_blk + o_blk) + acc_blk > 12 * 1024 * 1024:
        return None                                # too big for default scoped VMEM

    xp = jnp.pad(x.astype(jnp.bfloat16), ((0, 0), (ph, ph), (ph, ph), (0, 0)))
    wb = w if w.dtype == jnp.bfloat16 else w.astype(jnp.bfloat16)
    if b is None:
        b = jnp.zeros((Cout,), jnp.float32)
    bias = b.astype(jnp.float32).reshape(1, Cout)

    out = pl.pallas_call(
        functools.partial(_conv_s1_kernel, kh=kh, kw=kw, act=act, slope=0.1),
        out_shape=jax.ShapeDtypeStruct((N, H, W, Cout), out_dtype),
        grid=(N, Cout // TCout, Cin // TCin),
        in_specs=[
            pl.BlockSpec((1, Hp, Wp, TCin), lambda n, j, k: (n, 0, 0, k)),
            pl.BlockSpec((kh, kw, TCin, TCout), lambda n, j, k: (0, 0, k, j)),
            pl.BlockSpec((1, TCout), lambda n, j, k: (0, j)),
        ],
        out_specs=pl.BlockSpec((1, H, W, TCout), lambda n, j, k: (n, 0, 0, j)),
        scratch_shapes=[pltpu.VMEM((H * W, TCout), jnp.float32)],
        compiler_params=pltpu.CompilerParams(
            dimension_semantics=("parallel", "parallel", "arbitrary")),
    )(xp, wb, bias)
    return out


def _corr_kernel(l_ref, r_ref, o_ref, *, disps, inv_c, slope):
    """Per-pixel channel-mean correlation over static disparity shifts.  Shifts are
    done with pltpu.roll along W + iota mask on the reduced result (zero outside
    the image); the corr_activation LeakyReLU is fused into the store."""
    l = l_ref[...].astype(jnp.float32)             # (TR, W, C)
    r = r_ref[...].astype(jnp.float32)
    TR, W, _ = l.shape
    col = jax.lax.broadcasted_iota(jnp.int32, (TR, W), 1)
    outs = []
    for d in disps:
        sh = d % W
        rs = pltpu.roll(r, sh, 1) if sh else r     # rs[w] = r[(w - d) mod W]
        s = jnp.sum(l * rs, axis=-1) * inv_c       # (TR, W)
        if d > 0:
            s = jnp.where(col >= d, s, 0.0)        # also zeros everything if d >= W
        elif d < 0:
            s = jnp.where(col < W + d, s, 0.0)
        outs.append(s)
    corr = jnp.stack(outs, axis=-1)                # (TR, W, D)
    corr = jnp.where(corr >= 0.0, corr, slope * corr)
    # TODO(synk): lane-dense (W-last) output layout / MXU band-matmul for large W.
    o_ref[...] = corr.astype(o_ref.dtype)


def pallas_correlation(left, right, disps, slope=0.1, out_dtype=ACT_DTYPE):
    """left/right (R, W, C) -> (R, W, D): mean_c left[w] * right[w-d], leaky fused."""
    R, W, C = left.shape
    D = len(disps)
    lp = left.astype(jnp.bfloat16)
    rp = right.astype(jnp.bfloat16)

    row_bytes = W * C * 2
    budget = 2 * 1024 * 1024                       # per-operand VMEM block budget
    tr_cap = max(8, min(512, (budget // max(row_bytes, 1)) // 8 * 8))
    TR = min(tr_cap, _round_up(R, 8))
    if TR >= _round_up(R, 8) and R >= 16:          # >=2 row blocks (megacore / v7x 2-TC)
        TR = max(8, _round_up(TR // 2, 8))
    Rp = _round_up(R, TR)
    if Rp != R:
        lp = jnp.pad(lp, ((0, Rp - R), (0, 0), (0, 0)))
        rp = jnp.pad(rp, ((0, Rp - R), (0, 0), (0, 0)))

    out = pl.pallas_call(
        functools.partial(_corr_kernel, disps=tuple(disps),
                          inv_c=1.0 / C, slope=slope),
        out_shape=jax.ShapeDtypeStruct((Rp, W, D), out_dtype),
        grid=(Rp // TR,),
        in_specs=[
            pl.BlockSpec((TR, W, C), lambda i: (i, 0, 0)),
            pl.BlockSpec((TR, W, C), lambda i: (i, 0, 0)),
        ],
        out_specs=pl.BlockSpec((TR, W, D), lambda i: (i, 0, 0)),
        compiler_params=pltpu.CompilerParams(
            dimension_semantics=("parallel",)),
    )(lp, rp)
    return out[:R] if Rp != R else out


# ------------------------------------------------------------------ conv helpers (JAX glue -> Pallas kernels)

def _im2col(x, kh, kw, stride, pad):
    N, H, W, C = x.shape
    xp = jnp.pad(x, ((0, 0), (pad, pad), (pad, pad), (0, 0)))
    Hp, Wp = H + 2 * pad, W + 2 * pad
    oh = (Hp - kh) // stride + 1
    ow = (Wp - kw) // stride + 1
    cols = []
    for a in range(kh):
        for b in range(kw):
            cols.append(xp[:, a:a + (oh - 1) * stride + 1:stride,
                            b:b + (ow - 1) * stride + 1:stride, :])
    return jnp.concatenate(cols, axis=-1), oh, ow


def conv2d(x, w, b=None, stride=1, pad=None, act="none", out_dtype=None):
    if out_dtype is None:
        out_dtype = ACT_DTYPE
    kh, kw, cin, cout = w.shape
    if pad is None:
        pad = (kh - 1) // 2
    if stride == 1 and kh == kw and kh > 1 and kh % 2 == 1 and pad == (kh - 1) // 2:
        y = _conv2d_s1_fused(x, w, b, act, out_dtype)
        if y is not None:
            return y
    # im2col path (stride-2 / 7x7 / oversized fallback); patches live at output res.
    patches, oh, ow = _im2col(x.astype(jnp.bfloat16), kh, kw, stride, pad)
    out = matmul_bias_act(patches.reshape(-1, kh * kw * cin),
                          w.reshape(kh * kw * cin, cout), b, act,
                          out_dtype=out_dtype)
    return out.reshape(x.shape[0], oh, ow, cout)


def _conv_transpose2d_s2k4(x, w, b=None, act="none", out_dtype=None):
    """ConvTranspose2d(k=4, s=2, p=1) as 4 phase-wise 2x2 convs (sub-pixel).
    `w` is interpreted as the equivalent forward-conv HWIO kernel on the
    zero-dilated input (same convention as the original implementation)."""
    if out_dtype is None:
        out_dtype = ACT_DTYPE
    N, H, W, C = x.shape
    cout = w.shape[-1]
    xp = jnp.pad(x.astype(jnp.bfloat16), ((0, 0), (1, 1), (1, 1), (0, 0)))

    def phase_out(py, px):
        ky_taps, y_offs = ((0, 2), (0, 1)) if py == 0 else ((1, 3), (1, 2))
        kx_taps, x_offs = ((0, 2), (0, 1)) if px == 0 else ((1, 3), (1, 2))
        cols, wsub = [], []
        for ky, dy in zip(ky_taps, y_offs):
            for kx, dx in zip(kx_taps, x_offs):
                cols.append(xp[:, dy:dy + H, dx:dx + W, :])
                wsub.append(w[ky, kx])                       # (cin, cout)
        patches = jnp.concatenate(cols, axis=-1).reshape(-1, 4 * C)
        wmat = jnp.concatenate(wsub, axis=0)                 # (4*cin, cout)
        out = matmul_bias_act(patches, wmat, b, act, out_dtype=out_dtype)
        return out.reshape(N, H, W, cout)

    o00, o01 = phase_out(0, 0), phase_out(0, 1)
    o10, o11 = phase_out(1, 0), phase_out(1, 1)
    row0 = jnp.stack([o00, o01], axis=3)                     # (N, H, W, 2, cout)
    row1 = jnp.stack([o10, o11], axis=3)
    full = jnp.stack([row0, row1], axis=2)                   # (N, H, 2, W, 2, cout)
    return full.reshape(N, 2 * H, 2 * W, cout)


def conv_transpose2d(x, w, b=None, stride=2, pad=1, act="none", out_dtype=None):
    """ConvTranspose2d; `w` is the equivalent forward-conv HWIO weight."""
    if out_dtype is None:
        out_dtype = ACT_DTYPE
    k = w.shape[0]
    if stride == 1:
        return conv2d(x, w, b, stride=1, pad=k - 1 - pad, act=act, out_dtype=out_dtype)
    if stride == 2 and k == 4 and pad == 1:
        return _conv_transpose2d_s2k4(x, w, b, act=act, out_dtype=out_dtype)
    # generic fallback: zero-dilation (not hit by this network)
    N, H, W, C = x.shape
    xd = jnp.zeros((N, (H - 1) * stride + 1, (W - 1) * stride + 1, C), x.dtype)
    xd = xd.at[:, ::stride, ::stride, :].set(x)
    return conv2d(xd, w, b, stride=1, pad=k - 1 - pad, act=act, out_dtype=out_dtype)


def leaky(x):
    return jnp.where(x >= 0.0, x, 0.1 * x)


def cat(parts):
    return jnp.concatenate([p.astype(ACT_DTYPE) for p in parts], axis=-1)


def resblock(x, p, stride):
    out = conv2d(x, p["w1"], p["b1"], stride=stride, act="relu")
    out = conv2d(out, p["w2"], p["b2"], stride=1, act="none")
    if "wd" in p:
        res = conv2d(x, p["wd"], p["bd"], stride=stride, pad=0, act="none")
    else:
        res = x.astype(ACT_DTYPE)
    return jnp.maximum(out + res, 0.0)


def upsample_bilinear_align(x, oh, ow):
    """F.interpolate(mode='bilinear', align_corners=True) on NHWC."""
    N, H, W, C = x.shape
    ys = jnp.linspace(0.0, H - 1.0, oh)
    xs = jnp.linspace(0.0, W - 1.0, ow)
    y0 = jnp.floor(ys).astype(jnp.int32)
    x0 = jnp.floor(xs).astype(jnp.int32)
    y1 = jnp.minimum(y0 + 1, H - 1)
    x1 = jnp.minimum(x0 + 1, W - 1)
    wy = (ys - y0.astype(ys.dtype))[None, :, None, None]
    wx = (xs - x0.astype(xs.dtype))[None, None, :, None]
    a = x[:, y0][:, :, x0]
    b = x[:, y0][:, :, x1]
    c = x[:, y1][:, :, x0]
    d = x[:, y1][:, :, x1]
    return a * (1 - wy) * (1 - wx) + b * (1 - wy) * wx + c * wy * (1 - wx) + d * wy * wx


def shift_y_zero(x, ky):
    H = x.shape[1]
    xp = jnp.pad(x, ((0, 0), (1, 1), (0, 0), (0, 0)))
    return xp[:, 1 + ky:1 + ky + H, :, :]


def deform_conv_x(x, dx, w, out_dtype=jnp.float32):
    """3x3 deformable conv where every kernel tap shares the same per-pixel horizontal
    offset dx (vertical offset zero) — exactly the usage in _warping_MFN.
    The 3 horizontal taps of each vertical tap share 4 integer gathers."""
    N, H, W, C = x.shape
    cout = w.shape[-1]
    wcol = jnp.arange(W, dtype=jnp.float32)[None, None, :]
    pos = wcol + dx                                # center-tap sample position (N,H,W)
    p0 = jnp.floor(pos)
    f = (pos - p0)[..., None]                      # (N,H,W,1) shared fraction
    i0 = p0.astype(jnp.int32)

    cols = []
    for a in range(3):
        xs = shift_y_zero(x, a - 1)
        g = []
        for j in (-1, 0, 1, 2):                    # shared gathers for taps b=-1,0,+1
            idx = i0 + j
            valid = ((idx >= 0) & (idx <= W - 1))[..., None]
            idxc = jnp.clip(idx, 0, W - 1)
            idxb = jnp.broadcast_to(idxc[..., None], x.shape)
            gj = jnp.take_along_axis(xs, idxb, axis=2).astype(jnp.float32)
            g.append(jnp.where(valid, gj, 0.0))
        for b in range(3):
            cols.append(g[b] * (1.0 - f) + g[b + 1] * f)
    patches = jnp.concatenate(cols, axis=-1)
    out = matmul_bias_act(patches.reshape(-1, 9 * C), w.reshape(9 * C, cout),
                          None, "none", out_dtype=out_dtype)
    return out.reshape(N, H, W, cout)


def correlation(left, right, disps):
    """corr_d[x] = mean_c left[x] * right[x - d]; invalid positions -> 0 (build_corr),
    with the corr_activation LeakyReLU fused into the Pallas kernel."""
    N, H, W, C = left.shape
    out = pallas_correlation(left.reshape(N * H, W, C),
                             right.reshape(N * H, W, C), tuple(disps))
    return out.reshape(N, H, W, len(disps))


def warping_mfn(conv_r, disp, mask, feat, deform_w, toc_w, toc_b):
    # _warping_MFN: deform conv is called with per-tap offset = -(dy=0, dx=disp)
    dx = -disp[..., 0]
    warped = deform_conv_x(conv_r, dx, deform_w, out_dtype=jnp.float32)
    tradeoff = conv2d(feat, toc_w, toc_b, stride=1, act="none", out_dtype=jnp.float32)
    return leaky(warped * jax.nn.sigmoid(mask) + tradeoff).astype(ACT_DTYPE)


# ------------------------------------------------------------------ parameters

def make_params(seed=0):
    key = jax.random.PRNGKey(seed)
    counter = [0]

    def nxt():
        counter[0] += 1
        return jax.random.fold_in(key, counter[0])

    def cw(cin, cout, k):
        std = (2.0 / (cin * k * k)) ** 0.5        # kaiming_normal
        w = std * jax.random.normal(nxt(), (k, k, cin, cout), jnp.float32)
        return w.astype(jnp.bfloat16)             # pre-cast once (MXU operand dtype)

    def zb(c):
        return jnp.zeros((c,), jnp.float32)       # biases zeroed as in __init__

    def res_p(cin, cout, stride):
        p = {"w1": cw(cin, cout, 3), "b1": zb(cout),
             "w2": cw(cout, cout, 3), "b2": zb(cout)}
        if stride != 1 or cin != cout:
            p["wd"] = cw(cin, cout, 1)
            p["bd"] = zb(cout)
        return p

    P = {}
    P["conv1_w"], P["conv1_b"] = cw(3, 64, 7), zb(64)
    P["conv2"] = res_p(64, 128, 2)
    P["conv3"] = res_p(128, 256, 2)
    P["conv_redir"] = res_p(256, 32, 1)
    P["conv3_1"] = res_p(72, 256, 1)
    P["conv4"] = res_p(256, 512, 2)
    P["conv4_1"] = res_p(512, 512, 1)
    P["conv5"] = res_p(512, 512, 2)
    P["conv5_1"] = res_p(512, 512, 1)
    P["conv6"] = res_p(512, 1024, 2)
    P["conv6_1"] = res_p(1024, 1024, 1)
    # predict_flow: 3x3 conv, bias=False
    P["pf6_w"] = cw(1024, 1, 3)
    P["pf5_w"] = cw(512, 1, 3)
    P["pf4_w"] = cw(256, 1, 3)
    P["pf3_w"] = cw(128, 2, 3)
    P["pf2_w"] = cw(64, 2, 3)
    P["pf1_w"] = cw(32, 2, 3)
    P["pf0_w"] = cw(16, 1, 3)
    # iconv*: ConvTranspose2d(k=3, s=1, p=1, bias=True)
    for name, cin, cout in [("iconv5", 1025, 512), ("iconv4", 769, 256),
                            ("iconv3", 385, 128), ("iconv2", 198, 64),
                            ("iconv1", 102, 32), ("iconv0", 25, 16)]:
        P[name + "_w"], P[name + "_b"] = cw(cin, cout, 3), zb(cout)
    # upconv*: deconv(k=4, s=2, p=1, bias=False) + LeakyReLU
    for name, cin, cout in [("upconv5", 1024, 512), ("upconv4", 512, 256),
                            ("upconv3", 256, 128), ("upconv2", 128, 64),
                            ("upconv1", 64, 32), ("upconv0", 32, 16)]:
        P[name + "_w"] = cw(cin, cout, 4)
    # upflow*to*: ConvTranspose2d(1, 1, 4, 2, 1, bias=False)
    for name in ["upflow6to5", "upflow5to4", "upflow4to3",
                 "upflow3to2", "upflow2to1", "upflow1to0"]:
        P[name + "_w"] = cw(1, 1, 4)
    # upfeature*: deconv_MFN(k=4, s=2, p=1, bias=True)
    for name, cin in [("upfeature2", 128), ("upfeature1", 64), ("upfeature0", 32)]:
        P[name + "_w"], P[name + "_b"] = cw(cin, 16, 4), zb(16)
    # deformable convs (3x3, bias=False)
    P["deform2_w"] = cw(128, 128, 3)
    P["deform1_w"] = cw(64, 64, 3)
    P["deform0_w"] = cw(3, 3, 3)
    # trade-off convs (3x3, bias=True)
    P["toc2_w"], P["toc2_b"] = cw(16, 128, 3), zb(128)
    P["toc1_w"], P["toc1_b"] = cw(16, 64, 3), zb(64)
    P["toc0_w"], P["toc0_b"] = cw(16, 3, 3), zb(3)
    # bottlenecks (1x1 conv + ReLU)
    P["bn1_w"], P["bn1_b"] = cw(128, 64, 1), zb(64)
    P["bn0_w"], P["bn0_b"] = cw(128, 3, 1), zb(3)
    return P


# ------------------------------------------------------------------ forward

def esnet_m_forward(P, x_nchw):
    x = jnp.transpose(x_nchw.astype(jnp.float32), (0, 2, 3, 1))   # NCHW -> NHWC
    img_left, img_right = x[..., :3], x[..., 3:]
    f32 = jnp.float32

    def tower(img):
        c1 = conv2d(img, P["conv1_w"], P["conv1_b"], stride=2, act="leaky")
        c2 = resblock(c1, P["conv2"], 2)
        c3 = resblock(c2, P["conv3"], 2)
        return c1, c2, c3

    conv1_l, conv2_l, conv3a_l = tower(img_left)
    conv1_r, conv2_r, conv3a_r = tower(img_right)

    out_corr = correlation(conv3a_l, conv3a_r, list(range(40)))   # leaky fused
    out_conv3a_redir = resblock(conv3a_l, P["conv_redir"], 1)
    in_conv3b = cat([out_conv3a_redir, out_corr])                 # 32 + 40 = 72

    conv3b = resblock(in_conv3b, P["conv3_1"], 1)
    conv4a = resblock(conv3b, P["conv4"], 2)
    conv4b = resblock(conv4a, P["conv4_1"], 1)
    conv5a = resblock(conv4b, P["conv5"], 2)
    conv5b = resblock(conv5a, P["conv5_1"], 1)
    conv6a = resblock(conv5b, P["conv6"], 2)
    conv6b = resblock(conv6a, P["conv6_1"], 1)

    pr6 = conv2d(conv6b, P["pf6_w"], out_dtype=f32)
    upconv5 = conv_transpose2d(conv6b, P["upconv5_w"], None, 2, 1, act="leaky")
    upflow6 = conv_transpose2d(pr6, P["upflow6to5_w"], None, 2, 1)
    concat5 = cat([upconv5, upflow6, conv5b])
    iconv5 = conv_transpose2d(concat5, P["iconv5_w"], P["iconv5_b"], 1, 1)

    pr5 = conv2d(iconv5, P["pf5_w"], out_dtype=f32)
    upconv4 = conv_transpose2d(iconv5, P["upconv4_w"], None, 2, 1, act="leaky")
    upflow5 = conv_transpose2d(pr5, P["upflow5to4_w"], None, 2, 1)
    concat4 = cat([upconv4, upflow5, conv4b])
    iconv4 = conv_transpose2d(concat4, P["iconv4_w"], P["iconv4_b"], 1, 1)

    pr4 = conv2d(iconv4, P["pf4_w"], out_dtype=f32)
    upconv3 = conv_transpose2d(iconv4, P["upconv3_w"], None, 2, 1, act="leaky")
    upflow4 = conv_transpose2d(pr4, P["upflow4to3_w"], None, 2, 1)
    concat3 = cat([upconv3, upflow4, conv3b])
    iconv3 = conv_transpose2d(concat3, P["iconv3_w"], P["iconv3_b"], 1, 1)

    pr3_full = conv2d(iconv3, P["pf3_w"], out_dtype=f32)
    pr3, mask3 = pr3_full[..., 0:1], pr3_full[..., 1:2]

    # upconv2 + upfeature2 share the same input/patches -> one fused deconv matmul
    w_cat2 = jnp.concatenate([P["upconv2_w"], P["upfeature2_w"]], axis=-1)
    b_cat2 = jnp.concatenate([jnp.zeros((64,), jnp.float32), P["upfeature2_b"]])
    uf2 = conv_transpose2d(iconv3, w_cat2, b_cat2, 2, 1, act="leaky")
    upconv2, feat2 = uf2[..., :64], uf2[..., 64:]
    upflow3 = conv_transpose2d(pr3, P["upflow3to2_w"], None, 2, 1)
    oh, ow = upflow3.shape[1], upflow3.shape[2]
    upflow3_i = upsample_bilinear_align(pr3, oh, ow)
    upmask3_i = upsample_bilinear_align(mask3, oh, ow)
    conv2_r_warped = warping_mfn(conv2_r, upflow3_i / 4.0, upmask3_i, feat2,
                                 P["deform2_w"], P["toc2_w"], P["toc2_b"])
    out_corr2 = correlation(conv2_l, conv2_r_warped, [-2, -1, 0, 1, 2])
    concat2 = cat([upconv2, upflow3, conv2_l, out_corr2])
    iconv2 = conv_transpose2d(concat2, P["iconv2_w"], P["iconv2_b"], 1, 1)

    pr2_full = conv2d(iconv2, P["pf2_w"], out_dtype=f32)
    pr2, mask2 = pr2_full[..., 0:1], pr2_full[..., 1:2]

    w_cat1 = jnp.concatenate([P["upconv1_w"], P["upfeature1_w"]], axis=-1)
    b_cat1 = jnp.concatenate([jnp.zeros((32,), jnp.float32), P["upfeature1_b"]])
    uf1 = conv_transpose2d(iconv2, w_cat1, b_cat1, 2, 1, act="leaky")
    upconv1, feat1 = uf1[..., :32], uf1[..., 32:]
    upflow2 = conv_transpose2d(pr2, P["upflow2to1_w"], None, 2, 1)
    oh, ow = upflow2.shape[1], upflow2.shape[2]
    upflow2_i = upsample_bilinear_align(pr2, oh, ow)
    upmask2_i = upsample_bilinear_align(mask2, oh, ow)
    conv1l_new = conv2d(upsample_bilinear_align(conv2_l, oh, ow),
                        P["bn1_w"], P["bn1_b"], pad=0, act="relu")
    conv1r_new = conv2d(upsample_bilinear_align(conv2_r, oh, ow),
                        P["bn1_w"], P["bn1_b"], pad=0, act="relu")
    conv1_r_warped = warping_mfn(conv1r_new, upflow2_i / 2.0, upmask2_i, feat1,
                                 P["deform1_w"], P["toc1_w"], P["toc1_b"])
    out_corr1 = correlation(conv1l_new, conv1_r_warped, [-2, -1, 0, 1, 2])
    concat1 = cat([upconv1, upflow2, conv1_l, out_corr1])
    iconv1 = conv_transpose2d(concat1, P["iconv1_w"], P["iconv1_b"], 1, 1)

    pr1_full = conv2d(iconv1, P["pf1_w"], out_dtype=f32)
    pr1, mask1 = pr1_full[..., 0:1], pr1_full[..., 1:2]

    w_cat0 = jnp.concatenate([P["upconv0_w"], P["upfeature0_w"]], axis=-1)
    b_cat0 = jnp.concatenate([jnp.zeros((16,), jnp.float32), P["upfeature0_b"]])
    uf0 = conv_transpose2d(iconv1, w_cat0, b_cat0, 2, 1, act="leaky")
    upconv0, feat0 = uf0[..., :16], uf0[..., 16:]
    upflow1 = conv_transpose2d(pr1, P["upflow1to0_w"], None, 2, 1)
    oh, ow = upflow1.shape[1], upflow1.shape[2]
    upflow1_i = upsample_bilinear_align(pr1, oh, ow)
    upmask1_i = upsample_bilinear_align(mask1, oh, ow)
    img_left_new = conv2d(upsample_bilinear_align(conv2_l, oh, ow),
                          P["bn0_w"], P["bn0_b"], pad=0, act="relu")
    img_right_new = conv2d(upsample_bilinear_align(conv2_r, oh, ow),
                           P["bn0_w"], P["bn0_b"], pad=0, act="relu")
    conv0_r_warped = warping_mfn(img_right_new, upflow1_i, upmask1_i, feat0,
                                 P["deform0_w"], P["toc0_w"], P["toc0_b"])
    out_corr0 = correlation(img_left_new, conv0_r_warped, [-2, -1, 0, 1, 2])
    concat0 = cat([upconv0, upflow1, img_left, out_corr0])
    iconv0 = conv_transpose2d(concat0, P["iconv0_w"], P["iconv0_b"], 1, 1)

    pr0 = conv2d(iconv0, P["pf0_w"], act="relu", out_dtype=f32)   # maxdisp == -1 branch

    to_nchw = lambda t: jnp.transpose(t, (0, 3, 1, 2))
    return tuple(to_nchw(t) for t in (pr0, pr1, pr2, pr3, pr4, pr5, pr6))


# ------------------------------------------------------------------ main

if __name__ == "__main__":
    # stereo pair stacked along channels: (N, 2*input_channel, H, W); H, W multiples of 64
    key = jax.random.PRNGKey(0)
    x = jax.random.normal(key, (2, 6, 64, 64), jnp.float32)
    params = make_params(0)

    disps = esnet_m_forward(params, x)
    disps = jax.block_until_ready(disps)

    expected = [(2, 1, 64, 64), (2, 1, 32, 32), (2, 1, 16, 16), (2, 1, 8, 8),
                (2, 1, 4, 4), (2, 1, 2, 2), (2, 1, 1, 1)]
    assert [tuple(d.shape) for d in disps] == expected
    assert all(bool(jnp.isfinite(d).all()) for d in disps)
    print("KERNEL_OK")
</pallas_src>

<mosaic_0001>
module attributes {stable_mosaic.version = 11 : i64} {
  func.func @_mm_kernel_scratch(%arg0: i32, %arg1: i32, %arg2: i32, %arg3: memref<512x256xbf16, #tpu.memory_space<vmem>>, %arg4: memref<256x128xbf16, #tpu.memory_space<vmem>>, %arg5: memref<1x128xf32, #tpu.memory_space<vmem>>, %arg6: memref<512x128xbf16, #tpu.memory_space<vmem>>, %arg7: memref<512x128xf32, #tpu.memory_space<vmem>>) attributes {dimension_semantics = [#tpu.dimension_semantics<parallel>, #tpu.dimension_semantics<parallel>, #tpu.dimension_semantics<arbitrary>], iteration_bounds = array<i64: 4, 1, 1>, scalar_prefetch = 0 : i64, scratch_operands = 1 : i64, tpu.core_type = #tpu.core_type<tc>, window_params = [{transform_indices = @transform_0, window_bounds = array<i64: 512, 256>}, {transform_indices = @transform_1, window_bounds = array<i64: 256, 128>}, {transform_indices = @transform_2, window_bounds = array<i64: 1, 128>}, {transform_indices = @transform_3, window_bounds = array<i64: 512, 128>}]} {
    %c0_i32 = arith.constant 0 : i32
    %0 = arith.cmpi eq, %arg2, %c0_i32 : i32
    %1 = arith.extui %0 : i1 to i32
    %c0_i32_0 = arith.constant 0 : i32
    %2 = arith.cmpi ne, %1, %c0_i32_0 : i32
    scf.if %2 {
      %cst_10 = arith.constant 0.000000e+00 : f32
      %12 = vector.broadcast %cst_10 : f32 to vector<512x128xf32>
      %c0_11 = arith.constant 0 : index
      %c0_12 = arith.constant 0 : index
      %13 = vector.load %arg7[%c0_11, %c0_12] : memref<512x128xf32, #tpu.memory_space<vmem>>, vector<512x128xf32>
      tpu.vector_store %arg7[%c0_11, %c0_12], %12 {strides = array<i32>} : memref<512x128xf32, #tpu.memory_space<vmem>>, vector<512x128xf32>,
    } else {
    }
    %c0 = arith.constant 0 : index
    %c0_1 = arith.constant 0 : index
    %3 = vector.load %arg7[%c0, %c0_1] : memref<512x128xf32, #tpu.memory_space<vmem>>, vector<512x128xf32>
    %c0_2 = arith.constant 0 : index
    %c0_3 = arith.constant 0 : index
    %4 = vector.load %arg3[%c0_2, %c0_3] : memref<512x256xbf16, #tpu.memory_space<vmem>>, vector<512x256xbf16>
    %c0_4 = arith.constant 0 : index
    %c0_5 = arith.constant 0 : index
    %5 = vector.load %arg4[%c0_4, %c0_5] : memref<256x128xbf16, #tpu.memory_space<vmem>>, vector<256x128xbf16>
    %cst = arith.constant dense<0.000000e+00> : vector<512x128xf32>
    %6 = tpu.matmul %4, %5, %cst {dimension_numbers = #tpu.dot_dimension_numbers<[1], [0], [0], [1], [0, 0, 1, 1], [], []>} : vector<512x256xbf16>, vector<256x128xbf16>, vector<512x128xf32> -> vector<512x128xf32>
    %7 = arith.addf %3, %6 : vector<512x128xf32>
    %c0_6 = arith.constant 0 : index
    %c0_7 = arith.constant 0 : index
    %8 = vector.load %arg7[%c0_6, %c0_7] : memref<512x128xf32, #tpu.memory_space<vmem>>, vector<512x128xf32>
    tpu.vector_store %arg7[%c0_6, %c0_7], %7 {strides = array<i32>} : memref<512x128xf32, #tpu.memory_space<vmem>>, vector<512x128xf32>,
    %c0_i32_8 = arith.constant 0 : i32
    %9 = arith.cmpi eq, %arg2, %c0_i32_8 : i32
    %10 = arith.extui %9 : i1 to i32
    %c0_i32_9 = arith.constant 0 : i32
    %11 = arith.cmpi ne, %10, %c0_i32_9 : i32
    scf.if %11 {
      %c0_10 = arith.constant 0 : index
      %c0_11 = arith.constant 0 : index
      %12 = vector.load %arg7[%c0_10, %c0_11] : memref<512x128xf32, #tpu.memory_space<vmem>>, vector<512x128xf32>
      %c0_12 = arith.constant 0 : index
      %c0_13 = arith.constant 0 : index
      %13 = vector.load %arg5[%c0_12, %c0_13] : memref<1x128xf32, #tpu.memory_space<vmem>>, vector<1x128xf32>
      %14 = vector.broadcast %13 : vector<1x128xf32> to vector<512x128xf32>
      %15 = arith.addf %12, %14 : vector<512x128xf32>
      %cst_14 = arith.constant 0.000000e+00 : f32
      %16 = vector.broadcast %cst_14 : f32 to vector<512x128xf32>
      %17 = arith.cmpf oge, %15, %16 : vector<512x128xf32>
      %cst_15 = arith.constant 1.000000e-01 : f32
      %18 = vector.broadcast %cst_15 : f32 to vector<512x128xf32>
      %19 = arith.mulf %18, %15 : vector<512x128xf32>
      %20 = arith.select %17, %15, %19 : vector<512x128xi1>, vector<512x128xf32>
      %21 = arith.truncf %20 : vector<512x128xf32> to vector<512x128xbf16>
      %c0_16 = arith.constant 0 : index
      %c0_17 = arith.constant 0 : index
      %22 = vector.load %arg6[%c0_16, %c0_17] : memref<512x128xbf16, #tpu.memory_space<vmem>>, vector<512x128xbf16>
      tpu.vector_store %arg6[%c0_16, %c0_17], %21 {strides = array<i32>} : memref<512x128xbf16, #tpu.memory_space<vmem>>, vector<512x128xbf16>,
    } else {
    }
    return
  }
  func.func @transform_0(%arg0: i32, %arg1: i32, %arg2: i32) -> (i32, i32) {
    %c0_i32 = arith.constant 0 : i32
    return %arg0, %arg2 : i32, i32
  }
  func.func @transform_1(%arg0: i32, %arg1: i32, %arg2: i32) -> (i32, i32) {
    %c0_i32 = arith.constant 0 : i32
    return %arg2, %arg1 : i32, i32
  }
  func.func @transform_2(%arg0: i32, %arg1: i32, %arg2: i32) -> (i32, i32) {
    %c0_i32 = arith.constant 0 : i32
    %c0_i32_0 = arith.constant 0 : i32
    return %c0_i32, %arg1 : i32, i32
  }
  func.func @transform_3(%arg0: i32, %arg1: i32, %arg2: i32) -> (i32, i32) {
    %c0_i32 = arith.constant 0 : i32
    return %arg0, %arg1 : i32, i32
  }
}

</mosaic_0001>

<bundles_post_ra>
// kernel: tpu_custom_call.1
= control target key start
LH: loop header
LB: loop body
LE: loop exit
PB: predicated region body
PF: predicated region fallthrough
CT: control target
= control target key end

     0   :  { %8 = vsyncpa [#allocation4], 0  ;;  %s3299_s0 = inlined_call_operand.hbm [shape: bf16[2048,256], index: 0, kind: input, shape index: {}]   ;;  %s3300_s1 = inlined_call_operand.hbm [shape: bf16[256,128], index: 1, kind: input, shape index: {}]   ;;  %s3301_s2 = inlined_call_operand.vmem [shape: f32[1,128], index: 2, kind: input, shape index: {}]   ;;  %s3302_s3 = inlined_call_operand.hbm [shape: bf16[2048,128], index: 3, kind: output, shape index: {}]  }
   0x1   :  { %10 = vsyncpa [#allocation4 + $0x1], 0 }
   0x2   :  { %11 = vsyncpa [#allocation7], 0 }
   0x3   :  { %12 = vsyncpa [#allocation5], 0 }
   0x4   :  { %14 = vsyncpa [#allocation5 + $0x1], 0  ;;  %s2917_s12 = smov 0   ;;  %s2919_s13 = smov 0  }
   0x5   :  { %s2921_s14 = smov 0   ;;  %s2923_s15 = smov 0  }
   0x6   :  { %s2925_s16 = smov 0   ;;  %s2927_s17 = smov 0  }
   0x7 LB: > { %s2101_s18 = sadd.s32 4294967295, %s2885_s17   ;;  %s2102_s19 = sadd.s32 4294967294, %s2885_s17   ;;  %s2885_s17 = sphi %s2927_s17, %s20_s17   ;;  %s2881_s16 = sphi %s2925_s16, %s3319_s16   ;;  %s2877_s15 = sphi %s2923_s15, %s3318_s15   ;;  %s2873_s14 = sphi %s2921_s14, %s3317_s14   ;;  %s2869_s13 = sphi %s2919_s13, %s3316_s13   ;;  %s2865_s12 = sphi %s2917_s12, %s3315_s12  }
   0x8   : > { %p61_p0 = scmp.ne.s32.totalorder %s2869_s13, %s2865_s12  ;;  %p2951_p1 = scmp.eq.s32.totalorder %s2101_s18, 0 }
   0x9   : > { %p2955_p2 = scmp.eq.s32.totalorder %s2101_s18, 3  ;;  %p147_p3 = scmp.eq.s32.totalorder %s2102_s19, 3 }
   0xa   : > { %p2961_p4 = por %p2951_p1, %p61_p0  ;;  %p2103_p5 = scmp.ge.s32.totalorder %s2885_s17, 1 }
   0xb   : > { %p2966_p6 = por %p147_p3, %p61_p0  ;;  %p154_p7 = scmp.lt.s32.totalorder %s2885_s17, 5 }
   0xc   : > { %s2887_s25 = smov [#allocation6]   ;;  %s39_s28 = sadd.s32 1, %s2881_s16 }
   0xd   : > { %s3307_s23 = scalar_select %p2966_p6, 1, 0 }
   0xe   : > { %p2971_p8 = pnand %p2103_p5, %p154_p7  ;;  %s170_s26 = sshll.u32 %s2887_s25, 4  ;;  %s171_s26 = int_to_ptr.vmem [resolvable:$true] %s170_s26 }
   0xf   : > { %s2758_s29 = scalar_lea.vmem %s171_s26, 2048  ;;  %p2766_p3 = scmp.lt.s32.totalorder %s171_s26, %s171_s26 }
  0x10   : > { %p2563_p9 = pneg %p2971_p8  ;;  %p2759_p12 = scmp.ne.s32.totalorder %s171_s26, %s2758_s29 }
  0x11   : > { %p2767_p5 = scmp.lt.s32.totalorder %s2758_s29, %s2758_s29 }
  0x12   : > { %p2979_p10 = pnand %p2563_p9, %p2951_p1 }
  0x13   : > { %p2768_p7 = por %p2767_p5, %p2766_p3 }
  0x14   : > { %p2749_p11 = pneg %p2979_p10 }
  0x16   : > { %p2761_p13 = pnand %p2759_p12, %p2749_p11 }
  0x18   : > { %p2762_p0 = pneg %p2761_p13 }
  0x1a   : > { %p2769_p6 = pnand %p2768_p7, %p2762_p0 }
  0x1c   : > { %2772 = shalt.err (!%p2769_p6)
}
  0x1d   : > { %s2888_s30 = smov 64   ;;  %s2889_s4 = smov 4  }
  0x1e   : > { %2566 = dma.hbm_to_vmem [thread:$0]  (!%p2979_p10), %s3300_s1, 2048, %s171_s26, [#allocation7], %s2888_s30, %s2888_s30, %s2889_s4  }
  0x1f   : > { %p41_p9 = scmp.ge.s32.totalorder %s39_s28, 4  ;;  %s48_s7 = sadd.s32 1, %s2873_s14 }
  0x20   : > { %p55_p6 = scmp.ne.s32.totalorder %s2873_s14, %s2869_s13  ;;  %p56_p11 = scmp.eq.s32.totalorder %s2885_s17, 0 }
  0x21   : > { %s3321_s28 = smov (%p41_p9, %s39_s28), 0  ;;  %p2576_p0 = scmp.lt.s32.totalorder %s2885_s17, 4 }
  0x22   : > { %p2997_p12 = por %p56_p11, %p55_p6  ;;  %p3003_p13 = por %p2955_p2, %p55_p6 }
  0x23   : > { %s43_s10 = ssub.s32 %s2881_s16, %s3321_s28  ;;  %s190_s11 = sand.u32 1, %s2873_s14  }
  0x24   : > { %s3311_s9 = scalar_select %p3003_p13, 1, 0 }
  0x25   : > { %p46_p10 = scmp.eq.s32.totalorder %s43_s10, 0  ;;  %s2107_s18 = sshll.u32 %s190_s11, 9 }
  0x26   : > { %s2266_s25 = sshll.u32 %s2881_s16, 13  ;;  %s194_s30 = scalar_lea.vmem [#allocation3], %s2107_s18 }
  0x27   : > { %s3012_s19 = scalar_select %p46_p10, %s2873_s14, %s48_s7  }
  0x28   : > { %s203_s29 = scalar_lea.hbm %s3299_s0, %s2266_s25  ;;  %s204_s4 = sshll.u32 %s194_s30, 4  ;;  %s205_s4 = int_to_ptr.vmem [resolvable:$true] %s204_s4 }
  0x29   : > { %p3020_p2 = pnand %p2576_p0, %p2997_p12  ;;  %s191_s5 = scalar_lea.sflag [#allocation4], %s190_s11 }
  0x2a   : > { %s2786_s6 = scalar_lea.vmem %s205_s4, 8192  ;;  %s2890_s7 = smov [#allocation3]  }
  0x2b   : > { %p2775_p3 = pneg %p3020_p2  ;;  %p2787_p5 = scmp.ne.s32.totalorder %s205_s4, %s2786_s6 }
  0x2c   : > { %s2791_s10 = sshll.u32 %s2890_s7, 4  ;;  %s2792_s10 = int_to_ptr.vmem [resolvable:$false] %s2791_s10 }
  0x2d   : > { %p2789_p7 = pnand %p2787_p5, %p2775_p3  ;;  %s2793_s25 = scalar_lea.vmem %s2792_s10, 16384 }
  0x2e   : > { %p2794_p6 = scmp.lt.s32.totalorder %s205_s4, %s2792_s10  ;;  %p2795_p11 = scmp.lt.s32.totalorder %s2793_s25, %s2786_s6 }
  0x2f   : > { %p2790_p9 = pneg %p2789_p7 }
  0x30   : > { %p2796_p10 = por %p2795_p11, %p2794_p6 }
  0x32   : > { %p2797_p13 = pnand %p2796_p10, %p2790_p9 }
  0x34   : > { %2800 = shalt.err (!%p2797_p13)
}
  0x35   : > { %s2891_s8 = smov 128   ;;  %s2892_s18 = smov 8  }
  0x36   : > { %2570 = dma.hbm_to_vmem [thread:$0]  (!%p3020_p2), %s203_s29, 8192, %s205_s4, %s191_s5, %s2891_s8, %s2891_s8, %s2892_s18  }
  0x37   : > { %216 = sbr.rel (%p2971_p8) target bundleno = 466 (0x1d2), region = 32  ;;  %s3031_s11 = sand.u32 (!%p2971_p8), 1, %s2869_s13  }
  0x38   : > { %s2112_s26 = sshll.u32 (!%p2971_p8), %s3031_s11, 9  ;;  %s219_s27 = scalar_lea.sflag (!%p2971_p8), [#allocation4], %s3031_s11 }
  0x39   : > { %s3035_s30 = scalar_lea.vmem (!%p2971_p8), [#allocation3], %s2112_s26 }
  0x3c   : > { %2852 = dma.done.wait (%p2961_p4), %s219_s27, 8192  }
  0x3d   : > { %2854 = vsyncadd (%p2961_p4), %s219_s27, 4294959104 }
  0x3e   : > { %2856 = dma.done.wait (%p2951_p1), [#allocation7], 2048  }
  0x3f   : > { %2858 = vsyncadd (%p2951_p1), [#allocation7], 4294965248  ;;  %v2893_v0 = vmov 0   ;;  %v2635_v1 = vld [vmem:[#allocation6 + $0x38] sm:$0xff]   ;;  %v2636_v2 = vld [vmem:[#allocation6 + $0x30] sm:$0xff]   ;;  %s2114_s24 = sshll.u32 %s3031_s11, 8 }
  0x40   : > { %904 = vmatprep.subr.bf16.mxu0 %v2893_v0  ;;  %2523 = vmatprep.subr.bf16.mxu1 %v2893_v0  ;;  %v2637_v3 = vld [vmem:[#allocation6 + $0x28] sm:$0xff]   ;;  %v2638_v4 = vld [vmem:[#allocation6 + $0x20] sm:$0xff]   ;;  %v2639_v5 = vld [vmem:[#allocation6 + $0x18] sm:$0xff]   ;;  %s3153_s29 = scalar_lea.vmem [#allocation8], %s2114_s24  ;;  %s2331_s4 = sshll.u32 %s2877_s15, 12 }
  0x41   : > { %905 = vmatpush1.bf16.msra.mxu0 %v2635_v1  ;;  %2539 = vmatpush1.bf16.msra.mxu1 %v2635_v1  ;;  %v2653_v6 = vld [vmem:[%s3035_s30 + $0x4] ss:$8 sps:$4 sm:$0xff]   ;;  %v2640_v7 = vld [vmem:[#allocation6 + $0x10] sm:$0xff]   ;;  %v2643_v11 = vld [vmem:[#allocation6 + $0x78] sm:$0xff]   ;;  %s1986_s21 = sshll.u32 %s3153_s29, 4  ;;  %s3248_s7 = scalar_lea.hbm %s3302_s3, %s2331_s4  ;;  %s3250_s21 = int_to_ptr.vmem [resolvable:$true] %s1986_s21 }
  0x42   : > { %906 = vmatprep.subr.bf16.mxu0 %v2893_v0  ;;  %2524 = vmatprep.subr.bf16.mxu1 %v2893_v0  ;;  %v2656_v8 = vld [vmem:[%s3035_s30 + $0x104] ss:$8 sps:$4 sm:$0xff]   ;;  %v2644_v12 = vld [vmem:[#allocation6 + $0x70] sm:$0xff]   ;;  %v2647_v15 = vld [vmem:[#allocation6 + $0x58] sm:$0xff]   ;;  %s1972_s15 = scalar_lea.sflag [#allocation5], %s3031_s11  ;;  %s2801_s10 = scalar_lea.vmem %s3250_s21, 4096 }
  0x43   : > { %936 = vmatprep.mubr.bf16.mxu0 %v2653_v6  ;;  %1064 = vmatprep.mubr.bf16.mxu1 %v2656_v8  ;;  %v2641_v9 = vld [vmem:[#allocation6 + $0x8] sm:$0xff]   ;;  %v2642_v10 = vld [vmem:[#allocation6] sm:$0xff]   ;;  %v2648_v16 = vld [vmem:[#allocation6 + $0x50] sm:$0xff]   ;;  %p2802_p1 = scmp.ne.s32.totalorder %s3250_s21, %s2801_s10  ;;  %p3313_p4 = scmp.ne.s32.totalorder %s3311_s9, 0 }
  0x44   : > { %v2645_v13 = vld [vmem:[#allocation6 + $0x68] sm:$0xff]   ;;  %v2646_v14 = vld [vmem:[#allocation6 + $0x60] sm:$0xff]   ;;  %v2657_v21 = vld [vmem:[%s3035_s30 + $0x14] ss:$8 sps:$4 sm:$0xff]   ;;  %s2894_s25 = smov [#allocation8]  }
  0x45   : > { %907 = vmatpush1.bf16.msra.mxu0 %v2636_v2  ;;  %2540 = vmatpush1.bf16.msra.mxu1 %v2636_v2  ;;  %v2649_v17 = vld [vmem:[#allocation6 + $0x48] sm:$0xff]   ;;  %v2650_v18 = vld [vmem:[#allocation6 + $0x40] sm:$0xff]   ;;  %v2659_v22 = vld [vmem:[%s3035_s30 + $0x114] ss:$8 sps:$4 sm:$0xff]   ;;  %p2803_p8 = pnand %p2802_p1, %p3313_p4  ;;  %s2805_s8 = sshll.u32 %s2894_s25, 4  ;;  %s2806_s8 = int_to_ptr.vmem [resolvable:$false] %s2805_s8 }
  0x46   : > { %908 = vmatprep.subr.bf16.mxu0 %v2893_v0  ;;  %2525 = vmatprep.subr.bf16.mxu1 %v2893_v0  ;;  %v2651_v19 = vld [vmem:[%s3035_s30] ss:$8 sps:$4 sm:$0xff]   ;;  %v2661_v23 = vld [vmem:[%s3035_s30 + $0x10] ss:$8 sps:$4 sm:$0xff]   ;;  %v2663_v25 = vld [vmem:[%s3035_s30 + $0x24] ss:$8 sps:$4 sm:$0xff]   ;;  %p2808_p13 = scmp.lt.s32.totalorder %s3250_s21, %s2806_s8 }
  0x47   : > { %v2654_v20 = vld [vmem:[%s3035_s30 + $0x100] ss:$8 sps:$4 sm:$0xff]   ;;  %v2662_v24 = vld [vmem:[%s3035_s30 + $0x110] ss:$8 sps:$4 sm:$0xff]   ;;  %v2665_v26 = vld [vmem:[%s3035_s30 + $0x124] ss:$8 sps:$4 sm:$0xff]   ;;  %p2804_p12 = pneg %p2803_p8 }
  0x48   : > { %v2667_v27 = vld [vmem:[%s3035_s30 + $0x20] ss:$8 sps:$4 sm:$0xff]   ;;  %v2669_v29 = vld [vmem:[%s3035_s30 + $0x34] ss:$8 sps:$4 sm:$0xff]   ;;  %v2673_v31 = vld [vmem:[%s3035_s30 + $0x30] ss:$8 sps:$4 sm:$0xff]  }
  0x49   : > { %909 = vmatpush1.bf16.msra.mxu0 %v2637_v3  ;;  %2541 = vmatpush1.bf16.msra.mxu1 %v2637_v3  ;;  %v2668_v28 = vld [vmem:[%s3035_s30 + $0x120] ss:$8 sps:$4 sm:$0xff]   ;;  %v2671_v30 = vld [vmem:[%s3035_s30 + $0x134] ss:$8 sps:$4 sm:$0xff]   ;;  %v2674_v32 = vld [vmem:[%s3035_s30 + $0x130] ss:$8 sps:$4 sm:$0xff]  }
  0x4a   : > { %910 = vmatprep.subr.bf16.mxu0 %v2893_v0  ;;  %2526 = vmatprep.subr.bf16.mxu1 %v2893_v0  ;;  %v2675_v33 = vld [vmem:[%s3035_s30 + $0x44] ss:$8 sps:$4 sm:$0xff]   ;;  %v2679_v35 = vld [vmem:[%s3035_s30 + $0x40] ss:$8 sps:$4 sm:$0xff]   ;;  %v2681_v37 = vld [vmem:[%s3035_s30 + $0x54] ss:$8 sps:$4 sm:$0xff]  }
  0x4b   : > { %v2677_v34 = vld [vmem:[%s3035_s30 + $0x144] ss:$8 sps:$4 sm:$0xff]   ;;  %v2680_v36 = vld [vmem:[%s3035_s30 + $0x140] ss:$8 sps:$4 sm:$0xff]   ;;  %v2683_v38 = vld [vmem:[%s3035_s30 + $0x154] ss:$8 sps:$4 sm:$0xff]  }
  0x4c   : > { %v2685_v39 = vld [vmem:[%s3035_s30 + $0x50] ss:$8 sps:$4 sm:$0xff]   ;;  %v2687_v41 = vld [vmem:[%s3035_s30 + $0x64] ss:$8 sps:$4 sm:$0xff]   ;;  %v2691_v43 = vld [vmem:[%s3035_s30 + $0x60] ss:$8 sps:$4 sm:$0xff]  }
  0x4d   : > { %911 = vmatpush1.bf16.msra.mxu0 %v2638_v4  ;;  %2542 = vmatpush1.bf16.msra.mxu1 %v2638_v4  ;;  %v2686_v40 = vld [vmem:[%s3035_s30 + $0x150] ss:$8 sps:$4 sm:$0xff]   ;;  %v2689_v42 = vld [vmem:[%s3035_s30 + $0x164] ss:$8 sps:$4 sm:$0xff]   ;;  %v2692_v44 = vld [vmem:[%s3035_s30 + $0x160] ss:$8 sps:$4 sm:$0xff]  }
  0x4e   : > { %912 = vmatprep.subr.bf16.mxu0 %v2893_v0  ;;  %2527 = vmatprep.subr.bf16.mxu1 %v2893_v0  ;;  %v2693_v45 = vld [vmem:[%s3035_s30 + $0x74] ss:$8 sps:$4 sm:$0xff]   ;;  %v2697_v47 = vld [vmem:[%s3035_s30 + $0x70] ss:$8 sps:$4 sm:$0xff]   ;;  %v2699_v49 = vld [vmem:[%s3035_s30 + $0x84] ss:$8 sps:$4 sm:$0xff]  }
  0x4f   : > { %v2695_v46 = vld [vmem:[%s3035_s30 + $0x174] ss:$8 sps:$4 sm:$0xff]   ;;  %v2698_v48 = vld [vmem:[%s3035_s30 + $0x170] ss:$8 sps:$4 sm:$0xff]   ;;  %v2701_v50 = vld [vmem:[%s3035_s30 + $0x184] ss:$8 sps:$4 sm:$0xff]  }
  0x50   : > { %v2703_v51 = vld [vmem:[%s3035_s30 + $0x80] ss:$8 sps:$4 sm:$0xff]   ;;  %v2705_v53 = vld [vmem:[%s3035_s30 + $0x94] ss:$8 sps:$4 sm:$0xff]   ;;  %v2709_v55 = vld [vmem:[%s3035_s30 + $0x90] ss:$8 sps:$4 sm:$0xff]  }
  0x51   : > { %913 = vmatpush1.bf16.msra.mxu0 %v2639_v5  ;;  %2543 = vmatpush1.bf16.msra.mxu1 %v2639_v5  ;;  %v2704_v52 = vld [vmem:[%s3035_s30 + $0x180] ss:$8 sps:$4 sm:$0xff]   ;;  %v2707_v54 = vld [vmem:[%s3035_s30 + $0x194] ss:$8 sps:$4 sm:$0xff]   ;;  %v2710_v56 = vld [vmem:[%s3035_s30 + $0x190] ss:$8 sps:$4 sm:$0xff]  }
  0x52   : > { %914 = vmatprep.subr.bf16.mxu0 %v2893_v0  ;;  %2528 = vmatprep.subr.bf16.mxu1 %v2893_v0  ;;  %v2711_v57 = vld [vmem:[%s3035_s30 + $0xa4] ss:$8 sps:$4 sm:$0xff]   ;;  %v2715_v59 = vld [vmem:[%s3035_s30 + $0xa0] ss:$8 sps:$4 sm:$0xff]   ;;  %v2717_v61 = vld [vmem:[%s3035_s30 + $0xb4] ss:$8 sps:$4 sm:$0xff]  }
  0x53   : > { %v2713_v58 = vld [vmem:[%s3035_s30 + $0x1a4] ss:$8 sps:$4 sm:$0xff]   ;;  %v2716_v60 = vld [vmem:[%s3035_s30 + $0x1a0] ss:$8 sps:$4 sm:$0xff]   ;;  %v2719_v62 = vld [vmem:[%s3035_s30 + $0x1b4] ss:$8 sps:$4 sm:$0xff]  }
  0x54   : > { %v2721_v63 = vld [vmem:[%s3035_s30 + $0xb0] ss:$8 sps:$4 sm:$0xff]   ;;  %v2723_v1 = vld [vmem:[%s3035_s30 + $0xc4] ss:$8 sps:$4 sm:$0xff]   ;;  %v2727_v3 = vld [vmem:[%s3035_s30 + $0xc0] ss:$8 sps:$4 sm:$0xff]  }
  0x55   : > { %915 = vmatpush1.bf16.msra.mxu0 %v2640_v7  ;;  %2544 = vmatpush1.bf16.msra.mxu1 %v2640_v7  ;;  %v2725_v2 = vld [vmem:[%s3035_s30 + $0x1c4] ss:$8 sps:$4 sm:$0xff]   ;;  %v2728_v4 = vld [vmem:[%s3035_s30 + $0x1c0] ss:$8 sps:$4 sm:$0xff]   ;;  %v2729_v5 = vld [vmem:[%s3035_s30 + $0xd4] ss:$8 sps:$4 sm:$0xff]  }
  0x56   : > { %916 = vmatprep.subr.bf16.mxu0 %v2893_v0  ;;  %2529 = vmatprep.subr.bf16.mxu1 %v2893_v0  ;;  %v2731_v6 = vld [vmem:[%s3035_s30 + $0x1d4] ss:$8 sps:$4 sm:$0xff]   ;;  %v2733_v7 = vld [vmem:[%s3035_s30 + $0xd0] ss:$8 sps:$4 sm:$0xff]   ;;  %s2807_s18 = scalar_lea.vmem %s2806_s8, 8192 }
  0x57   : > { %v2734_v8 = vld [vmem:[%s3035_s30 + $0x1d0] ss:$8 sps:$4 sm:$0xff]   ;;  %p2809_p0 = scmp.lt.s32.totalorder %s2807_s18, %s2801_s10 }
  0x59   : > { %917 = vmatpush1.bf16.msra.mxu0 %v2641_v9  ;;  %2545 = vmatpush1.bf16.msra.mxu1 %v2641_v9  ;;  %v2735_v9 = vld [vmem:[%s3035_s30 + $0xe4] ss:$8 sps:$4 sm:$0xff]   ;;  %p2810_p2 = por %p2809_p0, %p2808_p13 }
  0x5a   : > { %918 = vmatprep.subr.bf16.mxu0 %v2893_v0  ;;  %2530 = vmatprep.subr.bf16.mxu1 %v2893_v0 }
  0x5b   : > { %p2811_p3 = pnand %p2810_p2, %p2804_p12 }
  0x5d   : > { %919 = vmatpush1.bf16.msra.mxu0 %v2642_v10  ;;  %2546 = vmatpush1.bf16.msra.mxu1 %v2642_v10  ;;  %v2737_v10 = vld [vmem:[%s3035_s30 + $0x1e4] ss:$8 sps:$4 sm:$0xff]  }
  0x5e   : > { %920 = vmatprep.subr.bf16.mxu0 %v2893_v0  ;;  %2531 = vmatprep.subr.bf16.mxu1 %v2893_v0 }
  0x61   : > { %921 = vmatpush2.bf16.msra.mxu0 %v2643_v11  ;;  %2547 = vmatpush2.bf16.msra.mxu1 %v2643_v11  ;;  %v2739_v11 = vld [vmem:[%s3035_s30 + $0xe0] ss:$8 sps:$4 sm:$0xff]  }
  0x62   : > { %922 = vmatprep.subr.bf16.mxu0 %v2893_v0  ;;  %2532 = vmatprep.subr.bf16.mxu1 %v2893_v0 }
  0x65   : > { %923 = vmatpush2.bf16.msra.mxu0 %v2644_v12  ;;  %2548 = vmatpush2.bf16.msra.mxu1 %v2644_v12  ;;  %v2740_v12 = vld [vmem:[%s3035_s30 + $0x1e0] ss:$8 sps:$4 sm:$0xff]  }
  0x66   : > { %924 = vmatprep.subr.bf16.mxu0 %v2893_v0  ;;  %2533 = vmatprep.subr.bf16.mxu1 %v2893_v0 }
  0x69   : > { %925 = vmatpush2.bf16.msra.mxu0 %v2645_v13  ;;  %2549 = vmatpush2.bf16.msra.mxu1 %v2645_v13  ;;  %v2741_v13 = vld [vmem:[%s3035_s30 + $0xf4] ss:$8 sps:$4 sm:$0xff]  }
  0x6a   : > { %926 = vmatprep.subr.bf16.mxu0 %v2893_v0  ;;  %2534 = vmatprep.subr.bf16.mxu1 %v2893_v0 }
  0x6d   : > { %927 = vmatpush2.bf16.msra.mxu0 %v2646_v14  ;;  %2550 = vmatpush2.bf16.msra.mxu1 %v2646_v14  ;;  %v2743_v14 = vld [vmem:[%s3035_s30 + $0x1f4] ss:$8 sps:$4 sm:$0xff]  }
  0x6e   : > { %928 = vmatprep.subr.bf16.mxu0 %v2893_v0  ;;  %2535 = vmatprep.subr.bf16.mxu1 %v2893_v0 }
  0x71   : > { %929 = vmatpush2.bf16.msra.mxu0 %v2647_v15  ;;  %2551 = vmatpush2.bf16.msra.mxu1 %v2647_v15  ;;  %v2745_v15 = vld [vmem:[%s3035_s30 + $0xf0] ss:$8 sps:$4 sm:$0xff]  }
  0x72   : > { %930 = vmatprep.subr.bf16.mxu0 %v2893_v0  ;;  %2536 = vmatprep.subr.bf16.mxu1 %v2893_v0 }
  0x75   : > { %931 = vmatpush2.bf16.msra.mxu0 %v2648_v16  ;;  %2552 = vmatpush2.bf16.msra.mxu1 %v2648_v16  ;;  %v2746_v16 = vld [vmem:[%s3035_s30 + $0x1f0] ss:$8 sps:$4 sm:$0xff]  }
  0x76   : > { %932 = vmatprep.subr.bf16.mxu0 %v2893_v0  ;;  %2537 = vmatprep.subr.bf16.mxu1 %v2893_v0 }
  0x79   : > { %933 = vmatpush2.bf16.msra.mxu0 %v2649_v17  ;;  %2553 = vmatpush2.bf16.msra.mxu1 %v2649_v17  ;;  %v3144_v17 = vld [vmem:[%s3301_s2] ss:$0 sm:$0xff] }
  0x7a   : > { %934 = vmatprep.subr.bf16.mxu0 %v2893_v0  ;;  %2538 = vmatprep.subr.bf16.mxu1 %v2893_v0  ;;  %v2722_v0 = vld [vmem:[%s3035_s30 + $0x1b0] ss:$8 sps:$4 sm:$0xff]  }
  0x7d   : > { %935 = vmatpush2.bf16.msra.mxu0 %v2650_v18  ;;  %2554 = vmatpush2.bf16.msra.mxu1 %v2650_v18 }
  0x80   : > { %937 = vmatmul.mubr.bf16.vlgmr.msra.gmra.mxu0 %v2651_v19  ;;  %1065 = vmatmul.mubr.bf16.vlgmr.msra.gmra.mxu1 %v2654_v20 }
  0x81   : > { %944 = vmatprep.mubr.bf16.mxu0 %v2657_v21  ;;  %1072 = vmatprep.mubr.bf16.mxu1 %v2659_v22 }
  0x88   : > { %945 = vmatmul.mubr.bf16.gmra.mxu0 %v2661_v23  ;;  %1073 = vmatmul.mubr.bf16.gmra.mxu1 %v2662_v24 }
  0x89   : > { %952 = vmatprep.mubr.bf16.mxu0 %v2663_v25  ;;  %1080 = vmatprep.mubr.bf16.mxu1 %v2665_v26 }
  0x90   : > { %953 = vmatmul.mubr.bf16.gmra.mxu0 %v2667_v27  ;;  %1081 = vmatmul.mubr.bf16.gmra.mxu1 %v2668_v28 }
  0x91   : > { %960 = vmatprep.mubr.bf16.mxu0 %v2669_v29  ;;  %1088 = vmatprep.mubr.bf16.mxu1 %v2671_v30 }
  0x98   : > { %961 = vmatmul.mubr.bf16.gmra.mxu0 %v2673_v31  ;;  %1089 = vmatmul.mubr.bf16.gmra.mxu1 %v2674_v32 }
  0x99   : > { %968 = vmatprep.mubr.bf16.mxu0 %v2675_v33  ;;  %1096 = vmatprep.mubr.bf16.mxu1 %v2677_v34 }
  0xa0   : > { %969 = vmatmul.mubr.bf16.gmra.mxu0 %v2679_v35  ;;  %1097 = vmatmul.mubr.bf16.gmra.mxu1 %v2680_v36 }
  0xa1   : > { %976 = vmatprep.mubr.bf16.mxu0 %v2681_v37  ;;  %1104 = vmatprep.mubr.bf16.mxu1 %v2683_v38 }
  0xa8   : > { %977 = vmatmul.mubr.bf16.gmra.mxu0 %v2685_v39  ;;  %1105 = vmatmul.mubr.bf16.gmra.mxu1 %v2686_v40 }
  0xa9   : > { %984 = vmatprep.mubr.bf16.mxu0 %v2687_v41  ;;  %1112 = vmatprep.mubr.bf16.mxu1 %v2689_v42 }
  0xb0   : > { %985 = vmatmul.mubr.bf16.gmra.mxu0 %v2691_v43  ;;  %1113 = vmatmul.mubr.bf16.gmra.mxu1 %v2692_v44 }
  0xb1   : > { %992 = vmatprep.mubr.bf16.mxu0 %v2693_v45  ;;  %1120 = vmatprep.mubr.bf16.mxu1 %v2695_v46 }
  0xb8   : > { %993 = vmatmul.mubr.bf16.gmra.mxu0 %v2697_v47  ;;  %1121 = vmatmul.mubr.bf16.gmra.mxu1 %v2698_v48 }
  0xb9   : > { %1000 = vmatprep.mubr.bf16.mxu0 %v2699_v49  ;;  %1128 = vmatprep.mubr.bf16.mxu1 %v2701_v50 }
  0xc0   : > { %1001 = vmatmul.mubr.bf16.gmra.mxu0 %v2703_v51  ;;  %1129 = vmatmul.mubr.bf16.gmra.mxu1 %v2704_v52 }
  0xc1   : > { %1008 = vmatprep.mubr.bf16.mxu0 %v2705_v53  ;;  %1136 = vmatprep.mubr.bf16.mxu1 %v2707_v54 }
  0xc8   : > { %1009 = vmatmul.mubr.bf16.gmra.mxu0 %v2709_v55  ;;  %1137 = vmatmul.mubr.bf16.gmra.mxu1 %v2710_v56 }
  0xc9   : > { %1016 = vmatprep.mubr.bf16.mxu0 %v2711_v57  ;;  %1144 = vmatprep.mubr.bf16.mxu1 %v2713_v58 }
  0xd0   : > { %1017 = vmatmul.mubr.bf16.gmra.mxu0 %v2715_v59  ;;  %1145 = vmatmul.mubr.bf16.gmra.mxu1 %v2716_v60 }
  0xd1   : > { %1024 = vmatprep.mubr.bf16.mxu0 %v2717_v61  ;;  %1152 = vmatprep.mubr.bf16.mxu1 %v2719_v62 }
  0xd8   : > { %1025 = vmatmul.mubr.bf16.gmra.mxu0 %v2721_v63  ;;  %1153 = vmatmul.mubr.bf16.gmra.mxu1 %v2722_v0 }
  0xd9   : > { %1032 = vmatprep.mubr.bf16.mxu0 %v2723_v1  ;;  %1160 = vmatprep.mubr.bf16.mxu1 %v2725_v2 }
  0xe0   : > { %1033 = vmatmul.mubr.bf16.gmra.mxu0 %v2727_v3  ;;  %1161 = vmatmul.mubr.bf16.gmra.mxu1 %v2728_v4 }
  0xe1   : > { %1040 = vmatprep.mubr.bf16.mxu0 %v2729_v5  ;;  %1168 = vmatprep.mubr.bf16.mxu1 %v2731_v6 }
  0xe8   : > { %1041 = vmatmul.mubr.bf16.gmra.mxu0 %v2733_v7  ;;  %1169 = vmatmul.mubr.bf16.gmra.mxu1 %v2734_v8 }
  0xe9   : > { %1048 = vmatprep.mubr.bf16.mxu0 %v2735_v9  ;;  %1176 = vmatprep.mubr.bf16.mxu1 %v2737_v10 }
  0xf0   : > { %1049 = vmatmul.mubr.bf16.gmra.mxu0 %v2739_v11  ;;  %1177 = vmatmul.mubr.bf16.gmra.mxu1 %v2740_v12 }
  0xf1   : > { %1056 = vmatprep.mubr.bf16.mxu0 %v2741_v13  ;;  %1184 = vmatprep.mubr.bf16.mxu1 %v2743_v14 }
  0xf8   : > { %1057 = vmatmul.mubr.bf16.gmra.mxu0 %v2745_v15  ;;  %1185 = vmatmul.mubr.bf16.gmra.mxu1 %v2746_v16 }
 0x140   : > { %v938_v18 = vpop.f32.mrf.mxu0  ;;  %v1066_v19 = vpop.f32.mrf.mxu1 }
 0x141   : > { %v1395_v20 = vadd.f32 %v3144_v17, %v938_v18  ;;  %v1427_v21 = vadd.f32 %v3144_v17, %v1066_v19 }
 0x142   : > { %v940_v22 = vpop.f32.mrf.mxu0  ;;  %v1068_v23 = vpop.f32.mrf.mxu1 }
 0x143   : > { %v1523_v24 = vmul.f32 0.1, %v1395_v20  ;;  %v1555_v25 = vmul.f32 0.1, %v1427_v21  ;;  %vm1459_vm0 = vcmp.ge.f32.partialorder %v1395_v20, 0.0  ;;  %vm1491_vm1 = vcmp.ge.f32.partialorder %v1427_v21, 0.0 }
 0x144   : > { %v941_v26 = vpop.f32.mrf.mxu0  ;;  %v1069_v27 = vpop.f32.mrf.mxu1 }
 0x145   : > { %v1396_v28 = vadd.f32 %v3144_v17, %v941_v26  ;;  %v1428_v29 = vadd.f32 %v3144_v17, %v1069_v27  ;;  %v1587_v34 = vsel %vm1459_vm0, %v1395_v20, %v1523_v24  ;;  %v1619_v35 = vsel %vm1491_vm1, %v1427_v21, %v1555_v25 }
 0x146   : > { %v943_v30 = vpop.f32.mrf.mxu0  ;;  %v1071_v31 = vpop.f32.mrf.mxu1 }
 0x147   : > { %vm1460_vm2 = vcmp.ge.f32.partialorder %v1396_v28, 0.0  ;;  %v1524_v32 = vmul.f32 0.1, %v1396_v28  ;;  %vm1492_vm3 = vcmp.ge.f32.partialorder %v1428_v29, 0.0  ;;  %v1556_v33 = vmul.f32 0.1, %v1428_v29 }
 0x148   : > { %v946_v36 = vpop.f32.mrf.mxu0  ;;  %v1074_v37 = vpop.f32.mrf.mxu1 }
 0x149   : > { %v1588_v38 = vsel %vm1460_vm2, %v1396_v28, %v1524_v32  ;;  %v1620_v39 = vsel %vm1492_vm3, %v1428_v29, %v1556_v33  ;;  %v1397_v40 = vadd.f32 %v3144_v17, %v946_v36  ;;  %v1429_v41 = vadd.f32 %v3144_v17, %v1074_v37 }
 0x14a   : > { %v2335_v42 = vpack.c.bf16 %v1588_v38, %v1587_v34  ;;  %v2415_v43 = vpack.c.bf16 %v1620_v39, %v1619_v35  ;;  %v948_v44 = vpop.f32.mrf.mxu0  ;;  %v1076_v45 = vpop.f32.mrf.mxu1 }
 0x14b   : > { %v1525_v46 = vmul.f32 0.1, %v1397_v40  ;;  %v1557_v47 = vmul.f32 0.1, %v1429_v41  ;;  %vm1461_vm4 = vcmp.ge.f32.partialorder %v1397_v40, 0.0  ;;  %vm1493_vm5 = vcmp.ge.f32.partialorder %v1429_v41, 0.0 }
 0x14c   : > { %2336 = vst [vmem:[%s3153_s29] sm:$0xff] %v2335_v42   ;;  %2507 = vst [vmem:[%s3153_s29 + $0x80] sm:$0xff] %v2415_v43   ;;  %v949_v48 = vpop.f32.mrf.mxu0  ;;  %v1077_v49 = vpop.f32.mrf.mxu1 }
 0x14d   : > { %v1398_v50 = vadd.f32 %v3144_v17, %v949_v48  ;;  %v1430_v51 = vadd.f32 %v3144_v17, %v1077_v49  ;;  %v1589_v56 = vsel %vm1461_vm4, %v1397_v40, %v1525_v46  ;;  %v1621_v57 = vsel %vm1493_vm5, %v1429_v41, %v1557_v47 }
 0x14e   : > { %v951_v52 = vpop.f32.mrf.mxu0  ;;  %v1079_v53 = vpop.f32.mrf.mxu1 }
 0x14f   : > { %vm1462_vm6 = vcmp.ge.f32.partialorder %v1398_v50, 0.0  ;;  %v1526_v54 = vmul.f32 0.1, %v1398_v50  ;;  %vm1494_vm7 = vcmp.ge.f32.partialorder %v1430_v51, 0.0  ;;  %v1558_v55 = vmul.f32 0.1, %v1430_v51 }
 0x150   : > { %v954_v58 = vpop.f32.mrf.mxu0  ;;  %v1082_v59 = vpop.f32.mrf.mxu1 }
 0x151   : > { %v1590_v60 = vsel %vm1462_vm6, %v1398_v50, %v1526_v54  ;;  %v1622_v61 = vsel %vm1494_vm7, %v1430_v51, %v1558_v55  ;;  %v1399_v62 = vadd.f32 %v3144_v17, %v954_v58  ;;  %v1431_v63 = vadd.f32 %v3144_v17, %v1082_v59 }
 0x152   : > { %v2340_v0 = vpack.c.bf16 %v1590_v60, %v1589_v56  ;;  %v2420_v1 = vpack.c.bf16 %v1622_v61, %v1621_v57  ;;  %v956_v2 = vpop.f32.mrf.mxu0  ;;  %v1084_v3 = vpop.f32.mrf.mxu1 }
 0x153   : > { %v1527_v4 = vmul.f32 0.1, %v1399_v62  ;;  %v1559_v5 = vmul.f32 0.1, %v1431_v63  ;;  %vm1463_vm8 = vcmp.ge.f32.partialorder %v1399_v62, 0.0  ;;  %vm1495_vm9 = vcmp.ge.f32.partialorder %v1431_v63, 0.0 }
 0x154   : > { %2492 = vst [vmem:[%s3153_s29 + $0x8] sm:$0xff] %v2340_v0   ;;  %2508 = vst [vmem:[%s3153_s29 + $0x88] sm:$0xff] %v2420_v1   ;;  %v957_v6 = vpop.f32.mrf.mxu0  ;;  %v1085_v7 = vpop.f32.mrf.mxu1 }
 0x155   : > { %v1400_v8 = vadd.f32 %v3144_v17, %v957_v6  ;;  %v1432_v9 = vadd.f32 %v3144_v17, %v1085_v7  ;;  %v1591_v14 = vsel %vm1463_vm8, %v1399_v62, %v1527_v4  ;;  %v1623_v15 = vsel %vm1495_vm9, %v1431_v63, %v1559_v5 }
 0x156   : > { %v959_v10 = vpop.f32.mrf.mxu0  ;;  %v1087_v11 = vpop.f32.mrf.mxu1 }
 0x157   : > { %vm1464_vm10 = vcmp.ge.f32.partialorder %v1400_v8, 0.0  ;;  %v1528_v12 = vmul.f32 0.1, %v1400_v8  ;;  %vm1496_vm11 = vcmp.ge.f32.partialorder %v1432_v9, 0.0  ;;  %v1560_v13 = vmul.f32 0.1, %v1432_v9 }
 0x158   : > { %v962_v16 = vpop.f32.mrf.mxu0  ;;  %v1090_v18 = vpop.f32.mrf.mxu1 }
 0x159   : > { %v1592_v19 = vsel %vm1464_vm10, %v1400_v8, %v1528_v12  ;;  %v1624_v20 = vsel %vm1496_vm11, %v1432_v9, %v1560_v13  ;;  %v1401_v21 = vadd.f32 %v3144_v17, %v962_v16  ;;  %v1433_v22 = vadd.f32 %v3144_v17, %v1090_v18 }
 0x15a   : > { %v2345_v23 = vpack.c.bf16 %v1592_v19, %v1591_v14  ;;  %v2425_v24 = vpack.c.bf16 %v1624_v20, %v1623_v15  ;;  %v964_v25 = vpop.f32.mrf.mxu0  ;;  %v1092_v26 = vpop.f32.mrf.mxu1 }
 0x15b   : > { %v1529_v27 = vmul.f32 0.1, %v1401_v21  ;;  %v1561_v28 = vmul.f32 0.1, %v1433_v22  ;;  %vm1465_vm12 = vcmp.ge.f32.partialorder %v1401_v21, 0.0  ;;  %vm1497_vm13 = vcmp.ge.f32.partialorder %v1433_v22, 0.0 }
 0x15c   : > { %2493 = vst [vmem:[%s3153_s29 + $0x10] sm:$0xff] %v2345_v23   ;;  %2509 = vst [vmem:[%s3153_s29 + $0x90] sm:$0xff] %v2425_v24   ;;  %v965_v29 = vpop.f32.mrf.mxu0  ;;  %v1093_v30 = vpop.f32.mrf.mxu1 }
 0x15d   : > { %v1402_v31 = vadd.f32 %v3144_v17, %v965_v29  ;;  %v1434_v32 = vadd.f32 %v3144_v17, %v1093_v30  ;;  %v1593_v37 = vsel %vm1465_vm12, %v1401_v21, %v1529_v27  ;;  %v1625_v38 = vsel %vm1497_vm13, %v1433_v22, %v1561_v28 }
 0x15e   : > { %v967_v33 = vpop.f32.mrf.mxu0  ;;  %v1095_v34 = vpop.f32.mrf.mxu1 }
 0x15f   : > { %vm1466_vm14 = vcmp.ge.f32.partialorder %v1402_v31, 0.0  ;;  %v1530_v35 = vmul.f32 0.1, %v1402_v31  ;;  %vm1498_vm15 = vcmp.ge.f32.partialorder %v1434_v32, 0.0  ;;  %v1562_v36 = vmul.f32 0.1, %v1434_v32 }
 0x160   : > { %v970_v39 = vpop.f32.mrf.mxu0  ;;  %v1098_v40 = vpop.f32.mrf.mxu1 }
 0x161   : > { %v1594_v41 = vsel %vm1466_vm14, %v1402_v31, %v1530_v35  ;;  %v1626_v42 = vsel %vm1498_vm15, %v1434_v32, %v1562_v36  ;;  %v1403_v43 = vadd.f32 %v3144_v17, %v970_v39  ;;  %v1435_v44 = vadd.f32 %v3144_v17, %v1098_v40 }
 0x162   : > { %v2350_v45 = vpack.c.bf16 %v1594_v41, %v1593_v37  ;;  %v2430_v46 = vpack.c.bf16 %v1626_v42, %v1625_v38  ;;  %v972_v47 = vpop.f32.mrf.mxu0  ;;  %v1100_v48 = vpop.f32.mrf.mxu1 }
 0x163   : > { %v1531_v49 = vmul.f32 0.1, %v1403_v43  ;;  %v1563_v50 = vmul.f32 0.1, %v1435_v44  ;;  %vm1467_vm0 = vcmp.ge.f32.partialorder %v1403_v43, 0.0  ;;  %vm1499_vm1 = vcmp.ge.f32.partialorder %v1435_v44, 0.0 }
 0x164   : > { %2494 = vst [vmem:[%s3153_s29 + $0x18] sm:$0xff] %v2350_v45   ;;  %2510 = vst [vmem:[%s3153_s29 + $0x98] sm:$0xff] %v2430_v46   ;;  %v973_v51 = vpop.f32.mrf.mxu0  ;;  %v1101_v52 = vpop.f32.mrf.mxu1 }
 0x165   : > { %v1404_v53 = vadd.f32 %v3144_v17, %v973_v51  ;;  %v1436_v54 = vadd.f32 %v3144_v17, %v1101_v52  ;;  %v1595_v59 = vsel %vm1467_vm0, %v1403_v43, %v1531_v49  ;;  %v1627_v60 = vsel %vm1499_vm1, %v1435_v44, %v1563_v50 }
 0x166   : > { %v975_v55 = vpop.f32.mrf.mxu0  ;;  %v1103_v56 = vpop.f32.mrf.mxu1 }
 0x167   : > { %vm1468_vm2 = vcmp.ge.f32.partialorder %v1404_v53, 0.0  ;;  %v1532_v57 = vmul.f32 0.1, %v1404_v53  ;;  %vm1500_vm3 = vcmp.ge.f32.partialorder %v1436_v54, 0.0  ;;  %v1564_v58 = vmul.f32 0.1, %v1436_v54 }
 0x168   : > { %v978_v61 = vpop.f32.mrf.mxu0  ;;  %v1106_v62 = vpop.f32.mrf.mxu1 }
 0x169   : > { %v1596_v63 = vsel %vm1468_vm2, %v1404_v53, %v1532_v57  ;;  %v1628_v0 = vsel %vm1500_vm3, %v1436_v54, %v1564_v58  ;;  %v1405_v1 = vadd.f32 %v3144_v17, %v978_v61  ;;  %v1437_v2 = vadd.f32 %v3144_v17, %v1106_v62 }
 0x16a   : > { %v2355_v3 = vpack.c.bf16 %v1596_v63, %v1595_v59  ;;  %v2435_v4 = vpack.c.bf16 %v1628_v0, %v1627_v60  ;;  %v980_v5 = vpop.f32.mrf.mxu0  ;;  %v1108_v6 = vpop.f32.mrf.mxu1 }
 0x16b   : > { %v1533_v7 = vmul.f32 0.1, %v1405_v1  ;;  %v1565_v8 = vmul.f32 0.1, %v1437_v2  ;;  %vm1469_vm4 = vcmp.ge.f32.partialorder %v1405_v1, 0.0  ;;  %vm1501_vm5 = vcmp.ge.f32.partialorder %v1437_v2, 0.0 }
 0x16c   : > { %2495 = vst [vmem:[%s3153_s29 + $0x20] sm:$0xff] %v2355_v3   ;;  %2511 = vst [vmem:[%s3153_s29 + $0xa0] sm:$0xff] %v2435_v4   ;;  %v981_v9 = vpop.f32.mrf.mxu0  ;;  %v1109_v10 = vpop.f32.mrf.mxu1 }
 0x16d   : > { %v1406_v11 = vadd.f32 %v3144_v17, %v981_v9  ;;  %v1438_v12 = vadd.f32 %v3144_v17, %v1109_v10  ;;  %v1597_v18 = vsel %vm1469_vm4, %v1405_v1, %v1533_v7  ;;  %v1629_v19 = vsel %vm1501_vm5, %v1437_v2, %v1565_v8 }
 0x16e   : > { %v983_v13 = vpop.f32.mrf.mxu0  ;;  %v1111_v14 = vpop.f32.mrf.mxu1 }
 0x16f   : > { %vm1470_vm6 = vcmp.ge.f32.partialorder %v1406_v11, 0.0  ;;  %v1534_v15 = vmul.f32 0.1, %v1406_v11  ;;  %vm1502_vm7 = vcmp.ge.f32.partialorder %v1438_v12, 0.0  ;;  %v1566_v16 = vmul.f32 0.1, %v1438_v12 }
 0x170   : > { %v986_v20 = vpop.f32.mrf.mxu0  ;;  %v1114_v21 = vpop.f32.mrf.mxu1 }
 0x171   : > { %v1598_v22 = vsel %vm1470_vm6, %v1406_v11, %v1534_v15  ;;  %v1630_v23 = vsel %vm1502_vm7, %v1438_v12, %v1566_v16  ;;  %v1407_v24 = vadd.f32 %v3144_v17, %v986_v20  ;;  %v1439_v25 = vadd.f32 %v3144_v17, %v1114_v21 }
 0x172   : > { %v2360_v26 = vpack.c.bf16 %v1598_v22, %v1597_v18  ;;  %v2440_v27 = vpack.c.bf16 %v1630_v23, %v1629_v19  ;;  %v988_v28 = vpop.f32.mrf.mxu0  ;;  %v1116_v29 = vpop.f32.mrf.mxu1 }
 0x173   : > { %v1535_v30 = vmul.f32 0.1, %v1407_v24  ;;  %v1567_v31 = vmul.f32 0.1, %v1439_v25  ;;  %vm1471_vm8 = vcmp.ge.f32.partialorder %v1407_v24, 0.0  ;;  %vm1503_vm9 = vcmp.ge.f32.partialorder %v1439_v25, 0.0 }
 0x174   : > { %2496 = vst [vmem:[%s3153_s29 + $0x28] sm:$0xff] %v2360_v26   ;;  %2512 = vst [vmem:[%s3153_s29 + $0xa8] sm:$0xff] %v2440_v27   ;;  %v989_v32 = vpop.f32.mrf.mxu0  ;;  %v1117_v33 = vpop.f32.mrf.mxu1 }
 0x175   : > { %v1408_v34 = vadd.f32 %v3144_v17, %v989_v32  ;;  %v1440_v35 = vadd.f32 %v3144_v17, %v1117_v33  ;;  %v1599_v40 = vsel %vm1471_vm8, %v1407_v24, %v1535_v30  ;;  %v1631_v41 = vsel %vm1503_vm9, %v1439_v25, %v1567_v31 }
 0x176   : > { %v991_v36 = vpop.f32.mrf.mxu0  ;;  %v1119_v37 = vpop.f32.mrf.mxu1 }
 0x177   : > { %vm1472_vm10 = vcmp.ge.f32.partialorder %v1408_v34, 0.0  ;;  %v1536_v38 = vmul.f32 0.1, %v1408_v34  ;;  %vm1504_vm11 = vcmp.ge.f32.partialorder %v1440_v35, 0.0  ;;  %v1568_v39 = vmul.f32 0.1, %v1440_v35 }
 0x178   : > { %v994_v42 = vpop.f32.mrf.mxu0  ;;  %v1122_v43 = vpop.f32.mrf.mxu1 }
 0x179   : > { %v1600_v44 = vsel %vm1472_vm10, %v1408_v34, %v1536_v38  ;;  %v1632_v45 = vsel %vm1504_vm11, %v1440_v35, %v1568_v39  ;;  %v1409_v46 = vadd.f32 %v3144_v17, %v994_v42  ;;  %v1441_v47 = vadd.f32 %v3144_v17, %v1122_v43 }
 0x17a   : > { %v2365_v48 = vpack.c.bf16 %v1600_v44, %v1599_v40  ;;  %v2445_v49 = vpack.c.bf16 %v1632_v45, %v1631_v41  ;;  %v996_v50 = vpop.f32.mrf.mxu0  ;;  %v1124_v51 = vpop.f32.mrf.mxu1 }
 0x17b   : > { %v1537_v52 = vmul.f32 0.1, %v1409_v46  ;;  %v1569_v53 = vmul.f32 0.1, %v1441_v47  ;;  %vm1473_vm12 = vcmp.ge.f32.partialorder %v1409_v46, 0.0  ;;  %vm1505_vm13 = vcmp.ge.f32.partialorder %v1441_v47, 0.0 }
 0x17c   : > { %2497 = vst [vmem:[%s3153_s29 + $0x30] sm:$0xff] %v2365_v48   ;;  %2513 = vst [vmem:[%s3153_s29 + $0xb0] sm:$0xff] %v2445_v49   ;;  %v997_v54 = vpop.f32.mrf.mxu0  ;;  %v1125_v55 = vpop.f32.mrf.mxu1 }
 0x17d   : > { %v1410_v56 = vadd.f32 %v3144_v17, %v997_v54  ;;  %v1442_v57 = vadd.f32 %v3144_v17, %v1125_v55  ;;  %v1601_v62 = vsel %vm1473_vm12, %v1409_v46, %v1537_v52  ;;  %v1633_v63 = vsel %vm1505_vm13, %v1441_v47, %v1569_v53 }
 0x17e   : > { %v999_v58 = vpop.f32.mrf.mxu0  ;;  %v1127_v59 = vpop.f32.mrf.mxu1 }
 0x17f   : > { %vm1474_vm14 = vcmp.ge.f32.partialorder %v1410_v56, 0.0  ;;  %v1538_v60 = vmul.f32 0.1, %v1410_v56  ;;  %vm1506_vm15 = vcmp.ge.f32.partialorder %v1442_v57, 0.0  ;;  %v1570_v61 = vmul.f32 0.1, %v1442_v57 }
 0x180   : > { %v1002_v0 = vpop.f32.mrf.mxu0  ;;  %v1130_v1 = vpop.f32.mrf.mxu1 }
 0x181   : > { %v1602_v2 = vsel %vm1474_vm14, %v1410_v56, %v1538_v60  ;;  %v1634_v3 = vsel %vm1506_vm15, %v1442_v57, %v1570_v61  ;;  %v1411_v4 = vadd.f32 %v3144_v17, %v1002_v0  ;;  %v1443_v5 = vadd.f32 %v3144_v17, %v1130_v1 }
 0x182   : > { %v2370_v6 = vpack.c.bf16 %v1602_v2, %v1601_v62  ;;  %v2450_v7 = vpack.c.bf16 %v1634_v3, %v1633_v63  ;;  %v1004_v8 = vpop.f32.mrf.mxu0  ;;  %v1132_v9 = vpop.f32.mrf.mxu1 }
 0x183   : > { %v1539_v10 = vmul.f32 0.1, %v1411_v4  ;;  %v1571_v11 = vmul.f32 0.1, %v1443_v5  ;;  %vm1475_vm0 = vcmp.ge.f32.partialorder %v1411_v4, 0.0  ;;  %vm1507_vm1 = vcmp.ge.f32.partialorder %v1443_v5, 0.0 }
 0x184   : > { %2498 = vst [vmem:[%s3153_s29 + $0x38] sm:$0xff] %v2370_v6   ;;  %2514 = vst [vmem:[%s3153_s29 + $0xb8] sm:$0xff] %v2450_v7   ;;  %v1005_v12 = vpop.f32.mrf.mxu0  ;;  %v1133_v13 = vpop.f32.mrf.mxu1 }
 0x185   : > { %v1412_v14 = vadd.f32 %v3144_v17, %v1005_v12  ;;  %v1444_v15 = vadd.f32 %v3144_v17, %v1133_v13  ;;  %v1603_v21 = vsel %vm1475_vm0, %v1411_v4, %v1539_v10  ;;  %v1635_v22 = vsel %vm1507_vm1, %v1443_v5, %v1571_v11 }
 0x186   : > { %v1007_v16 = vpop.f32.mrf.mxu0  ;;  %v1135_v18 = vpop.f32.mrf.mxu1 }
 0x187   : > { %vm1476_vm2 = vcmp.ge.f32.partialorder %v1412_v14, 0.0  ;;  %v1540_v19 = vmul.f32 0.1, %v1412_v14  ;;  %vm1508_vm3 = vcmp.ge.f32.partialorder %v1444_v15, 0.0  ;;  %v1572_v20 = vmul.f32 0.1, %v1444_v15 }
 0x188   : > { %v1010_v23 = vpop.f32.mrf.mxu0  ;;  %v1138_v24 = vpop.f32.mrf.mxu1 }
 0x189   : > { %v1604_v25 = vsel %vm1476_vm2, %v1412_v14, %v1540_v19  ;;  %v1636_v26 = vsel %vm1508_vm3, %v1444_v15, %v1572_v20  ;;  %v1413_v27 = vadd.f32 %v3144_v17, %v1010_v23  ;;  %v1445_v28 = vadd.f32 %v3144_v17, %v1138_v24 }
 0x18a   : > { %v2375_v29 = vpack.c.bf16 %v1604_v25, %v1603_v21  ;;  %v2455_v30 = vpack.c.bf16 %v1636_v26, %v1635_v22  ;;  %v1012_v31 = vpop.f32.mrf.mxu0  ;;  %v1140_v32 = vpop.f32.mrf.mxu1 }
 0x18b   : > { %v1541_v33 = vmul.f32 0.1, %v1413_v27  ;;  %v1573_v34 = vmul.f32 0.1, %v1445_v28  ;;  %vm1477_vm4 = vcmp.ge.f32.partialorder %v1413_v27, 0.0  ;;  %vm1509_vm5 = vcmp.ge.f32.partialorder %v1445_v28, 0.0 }
 0x18c   : > { %2499 = vst [vmem:[%s3153_s29 + $0x40] sm:$0xff] %v2375_v29   ;;  %2515 = vst [vmem:[%s3153_s29 + $0xc0] sm:$0xff] %v2455_v30   ;;  %v1013_v35 = vpop.f32.mrf.mxu0  ;;  %v1141_v36 = vpop.f32.mrf.mxu1 }
 0x18d   : > { %v1414_v37 = vadd.f32 %v3144_v17, %v1013_v35  ;;  %v1446_v38 = vadd.f32 %v3144_v17, %v1141_v36  ;;  %v1605_v43 = vsel %vm1477_vm4, %v1413_v27, %v1541_v33  ;;  %v1637_v44 = vsel %vm1509_vm5, %v1445_v28, %v1573_v34 }
 0x18e   : > { %v1015_v39 = vpop.f32.mrf.mxu0  ;;  %v1143_v40 = vpop.f32.mrf.mxu1 }
 0x18f   : > { %vm1478_vm6 = vcmp.ge.f32.partialorder %v1414_v37, 0.0  ;;  %v1542_v41 = vmul.f32 0.1, %v1414_v37  ;;  %vm1510_vm7 = vcmp.ge.f32.partialorder %v1446_v38, 0.0  ;;  %v1574_v42 = vmul.f32 0.1, %v1446_v38 }
 0x190   : > { %v1018_v45 = vpop.f32.mrf.mxu0  ;;  %v1146_v46 = vpop.f32.mrf.mxu1 }
 0x191   : > { %v1606_v47 = vsel %vm1478_vm6, %v1414_v37, %v1542_v41  ;;  %v1638_v48 = vsel %vm1510_vm7, %v1446_v38, %v1574_v42  ;;  %v1415_v49 = vadd.f32 %v3144_v17, %v1018_v45  ;;  %v1447_v50 = vadd.f32 %v3144_v17, %v1146_v46 }
 0x192   : > { %v2380_v51 = vpack.c.bf16 %v1606_v47, %v1605_v43  ;;  %v2460_v52 = vpack.c.bf16 %v1638_v48, %v1637_v44  ;;  %v1020_v53 = vpop.f32.mrf.mxu0  ;;  %v1148_v54 = vpop.f32.mrf.mxu1 }
 0x193   : > { %v1543_v55 = vmul.f32 0.1, %v1415_v49  ;;  %v1575_v56 = vmul.f32 0.1, %v1447_v50  ;;  %vm1479_vm8 = vcmp.ge.f32.partialorder %v1415_v49, 0.0  ;;  %vm1511_vm9 = vcmp.ge.f32.partialorder %v1447_v50, 0.0 }
 0x194   : > { %2500 = vst [vmem:[%s3153_s29 + $0x48] sm:$0xff] %v2380_v51   ;;  %2516 = vst [vmem:[%s3153_s29 + $0xc8] sm:$0xff] %v2460_v52   ;;  %v1021_v57 = vpop.f32.mrf.mxu0  ;;  %v1149_v58 = vpop.f32.mrf.mxu1 }
 0x195   : > { %v1416_v59 = vadd.f32 %v3144_v17, %v1021_v57  ;;  %v1448_v60 = vadd.f32 %v3144_v17, %v1149_v58  ;;  %v1607_v1 = vsel %vm1479_vm8, %v1415_v49, %v1543_v55  ;;  %v1639_v2 = vsel %vm1511_vm9, %v1447_v50, %v1575_v56 }
 0x196   : > { %v1023_v61 = vpop.f32.mrf.mxu0  ;;  %v1151_v62 = vpop.f32.mrf.mxu1 }
 0x197   : > { %vm1480_vm10 = vcmp.ge.f32.partialorder %v1416_v59, 0.0  ;;  %v1544_v63 = vmul.f32 0.1, %v1416_v59  ;;  %vm1512_vm11 = vcmp.ge.f32.partialorder %v1448_v60, 0.0  ;;  %v1576_v0 = vmul.f32 0.1, %v1448_v60 }
 0x198   : > { %v1026_v3 = vpop.f32.mrf.mxu0  ;;  %v1154_v4 = vpop.f32.mrf.mxu1 }
 0x199   : > { %v1608_v5 = vsel %vm1480_vm10, %v1416_v59, %v1544_v63  ;;  %v1640_v6 = vsel %vm1512_vm11, %v1448_v60, %v1576_v0  ;;  %v1417_v7 = vadd.f32 %v3144_v17, %v1026_v3  ;;  %v1449_v8 = vadd.f32 %v3144_v17, %v1154_v4 }
 0x19a   : > { %v2385_v9 = vpack.c.bf16 %v1608_v5, %v1607_v1  ;;  %v2465_v10 = vpack.c.bf16 %v1640_v6, %v1639_v2  ;;  %v1028_v11 = vpop.f32.mrf.mxu0  ;;  %v1156_v12 = vpop.f32.mrf.mxu1 }
 0x19b   : > { %v1545_v13 = vmul.f32 0.1, %v1417_v7  ;;  %v1577_v14 = vmul.f32 0.1, %v1449_v8  ;;  %vm1481_vm12 = vcmp.ge.f32.partialorder %v1417_v7, 0.0  ;;  %vm1513_vm13 = vcmp.ge.f32.partialorder %v1449_v8, 0.0 }
 0x19c   : > { %2501 = vst [vmem:[%s3153_s29 + $0x50] sm:$0xff] %v2385_v9   ;;  %2517 = vst [vmem:[%s3153_s29 + $0xd0] sm:$0xff] %v2465_v10   ;;  %v1029_v15 = vpop.f32.mrf.mxu0  ;;  %v1157_v16 = vpop.f32.mrf.mxu1 }
 0x19d   : > { %v1418_v18 = vadd.f32 %v3144_v17, %v1029_v15  ;;  %v1450_v19 = vadd.f32 %v3144_v17, %v1157_v16  ;;  %v1609_v24 = vsel %vm1481_vm12, %v1417_v7, %v1545_v13  ;;  %v1641_v25 = vsel %vm1513_vm13, %v1449_v8, %v1577_v14 }
 0x19e   : > { %v1031_v20 = vpop.f32.mrf.mxu0  ;;  %v1159_v21 = vpop.f32.mrf.mxu1 }
 0x19f   : > { %vm1482_vm14 = vcmp.ge.f32.partialorder %v1418_v18, 0.0  ;;  %v1546_v22 = vmul.f32 0.1, %v1418_v18  ;;  %vm1514_vm15 = vcmp.ge.f32.partialorder %v1450_v19, 0.0  ;;  %v1578_v23 = vmul.f32 0.1, %v1450_v19 }
 0x1a0   : > { %v1034_v26 = vpop.f32.mrf.mxu0  ;;  %v1162_v27 = vpop.f32.mrf.mxu1 }
 0x1a1   : > { %v1610_v28 = vsel %vm1482_vm14, %v1418_v18, %v1546_v22  ;;  %v1642_v29 = vsel %vm1514_vm15, %v1450_v19, %v1578_v23  ;;  %v1419_v30 = vadd.f32 %v3144_v17, %v1034_v26  ;;  %v1451_v31 = vadd.f32 %v3144_v17, %v1162_v27 }
 0x1a2   : > { %v2390_v32 = vpack.c.bf16 %v1610_v28, %v1609_v24  ;;  %v2470_v33 = vpack.c.bf16 %v1642_v29, %v1641_v25  ;;  %v1036_v34 = vpop.f32.mrf.mxu0  ;;  %v1164_v35 = vpop.f32.mrf.mxu1 }
 0x1a3   : > { %v1547_v36 = vmul.f32 0.1, %v1419_v30  ;;  %v1579_v37 = vmul.f32 0.1, %v1451_v31  ;;  %vm1483_vm0 = vcmp.ge.f32.partialorder %v1419_v30, 0.0  ;;  %vm1515_vm1 = vcmp.ge.f32.partialorder %v1451_v31, 0.0 }
 0x1a4   : > { %2502 = vst [vmem:[%s3153_s29 + $0x58] sm:$0xff] %v2390_v32   ;;  %2518 = vst [vmem:[%s3153_s29 + $0xd8] sm:$0xff] %v2470_v33   ;;  %v1037_v38 = vpop.f32.mrf.mxu0  ;;  %v1165_v39 = vpop.f32.mrf.mxu1 }
 0x1a5   : > { %v1420_v40 = vadd.f32 %v3144_v17, %v1037_v38  ;;  %v1452_v41 = vadd.f32 %v3144_v17, %v1165_v39  ;;  %v1611_v46 = vsel %vm1483_vm0, %v1419_v30, %v1547_v36  ;;  %v1643_v47 = vsel %vm1515_vm1, %v1451_v31, %v1579_v37 }
 0x1a6   : > { %v1039_v42 = vpop.f32.mrf.mxu0  ;;  %v1167_v43 = vpop.f32.mrf.mxu1 }
 0x1a7   : > { %vm1484_vm2 = vcmp.ge.f32.partialorder %v1420_v40, 0.0  ;;  %v1548_v44 = vmul.f32 0.1, %v1420_v40  ;;  %vm1516_vm3 = vcmp.ge.f32.partialorder %v1452_v41, 0.0  ;;  %v1580_v45 = vmul.f32 0.1, %v1452_v41 }
 0x1a8   : > { %v1042_v48 = vpop.f32.mrf.mxu0  ;;  %v1170_v49 = vpop.f32.mrf.mxu1 }
 0x1a9   : > { %v1612_v50 = vsel %vm1484_vm2, %v1420_v40, %v1548_v44  ;;  %v1644_v51 = vsel %vm1516_vm3, %v1452_v41, %v1580_v45  ;;  %v1421_v52 = vadd.f32 %v3144_v17, %v1042_v48  ;;  %v1453_v53 = vadd.f32 %v3144_v17, %v1170_v49 }
 0x1aa   : > { %v2395_v54 = vpack.c.bf16 %v1612_v50, %v1611_v46  ;;  %v2475_v55 = vpack.c.bf16 %v1644_v51, %v1643_v47  ;;  %v1044_v56 = vpop.f32.mrf.mxu0  ;;  %v1172_v57 = vpop.f32.mrf.mxu1 }
 0x1ab   : > { %v1549_v58 = vmul.f32 0.1, %v1421_v52  ;;  %v1581_v59 = vmul.f32 0.1, %v1453_v53  ;;  %vm1485_vm4 = vcmp.ge.f32.partialorder %v1421_v52, 0.0  ;;  %vm1517_vm5 = vcmp.ge.f32.partialorder %v1453_v53, 0.0 }
 0x1ac   : > { %2503 = vst [vmem:[%s3153_s29 + $0x60] sm:$0xff] %v2395_v54   ;;  %2519 = vst [vmem:[%s3153_s29 + $0xe0] sm:$0xff] %v2475_v55   ;;  %v1045_v60 = vpop.f32.mrf.mxu0  ;;  %v1173_v61 = vpop.f32.mrf.mxu1 }
 0x1ad   : > { %v1422_v62 = vadd.f32 %v3144_v17, %v1045_v60  ;;  %v1454_v63 = vadd.f32 %v3144_v17, %v1173_v61  ;;  %v1613_v4 = vsel %vm1485_vm4, %v1421_v52, %v1549_v58  ;;  %v1645_v5 = vsel %vm1517_vm5, %v1453_v53, %v1581_v59 }
 0x1ae   : > { %v1047_v0 = vpop.f32.mrf.mxu0  ;;  %v1175_v1 = vpop.f32.mrf.mxu1 }
 0x1af   : > { %vm1486_vm6 = vcmp.ge.f32.partialorder %v1422_v62, 0.0  ;;  %v1550_v2 = vmul.f32 0.1, %v1422_v62  ;;  %vm1518_vm7 = vcmp.ge.f32.partialorder %v1454_v63, 0.0  ;;  %v1582_v3 = vmul.f32 0.1, %v1454_v63 }
 0x1b0   : > { %v1050_v6 = vpop.f32.mrf.mxu0  ;;  %v1178_v7 = vpop.f32.mrf.mxu1 }
 0x1b1   : > { %v1614_v8 = vsel %vm1486_vm6, %v1422_v62, %v1550_v2  ;;  %v1646_v9 = vsel %vm1518_vm7, %v1454_v63, %v1582_v3  ;;  %v1423_v10 = vadd.f32 %v3144_v17, %v1050_v6  ;;  %v1455_v11 = vadd.f32 %v3144_v17, %v1178_v7 }
 0x1b2   : > { %v2400_v12 = vpack.c.bf16 %v1614_v8, %v1613_v4  ;;  %v2480_v13 = vpack.c.bf16 %v1646_v9, %v1645_v5  ;;  %v1052_v14 = vpop.f32.mrf.mxu0  ;;  %v1180_v15 = vpop.f32.mrf.mxu1 }
 0x1b3   : > { %v1551_v16 = vmul.f32 0.1, %v1423_v10  ;;  %v1583_v18 = vmul.f32 0.1, %v1455_v11  ;;  %vm1487_vm8 = vcmp.ge.f32.partialorder %v1423_v10, 0.0  ;;  %vm1519_vm9 = vcmp.ge.f32.partialorder %v1455_v11, 0.0 }
 0x1b4   : > { %2504 = vst [vmem:[%s3153_s29 + $0x68] sm:$0xff] %v2400_v12   ;;  %2520 = vst [vmem:[%s3153_s29 + $0xe8] sm:$0xff] %v2480_v13   ;;  %v1053_v19 = vpop.f32.mrf.mxu0  ;;  %v1181_v20 = vpop.f32.mrf.mxu1 }
 0x1b5   : > { %v1424_v21 = vadd.f32 %v3144_v17, %v1053_v19  ;;  %v1456_v22 = vadd.f32 %v3144_v17, %v1181_v20  ;;  %v1615_v27 = vsel %vm1487_vm8, %v1423_v10, %v1551_v16  ;;  %v1647_v28 = vsel %vm1519_vm9, %v1455_v11, %v1583_v18 }
 0x1b6   : > { %v1055_v23 = vpop.f32.mrf.mxu0  ;;  %v1183_v24 = vpop.f32.mrf.mxu1 }
 0x1b7   : > { %vm1488_vm10 = vcmp.ge.f32.partialorder %v1424_v21, 0.0  ;;  %v1552_v25 = vmul.f32 0.1, %v1424_v21  ;;  %vm1520_vm11 = vcmp.ge.f32.partialorder %v1456_v22, 0.0  ;;  %v1584_v26 = vmul.f32 0.1, %v1456_v22 }
 0x1b8   : > { %v1058_v29 = vpop.f32.mrf.mxu0  ;;  %v1186_v30 = vpop.f32.mrf.mxu1 }
 0x1b9   : > { %v1616_v31 = vsel %vm1488_vm10, %v1424_v21, %v1552_v25  ;;  %v1648_v32 = vsel %vm1520_vm11, %v1456_v22, %v1584_v26  ;;  %v1425_v33 = vadd.f32 %v3144_v17, %v1058_v29  ;;  %v1457_v34 = vadd.f32 %v3144_v17, %v1186_v30 }
 0x1ba   : > { %v2405_v35 = vpack.c.bf16 %v1616_v31, %v1615_v27  ;;  %v2485_v36 = vpack.c.bf16 %v1648_v32, %v1647_v28  ;;  %v1060_v37 = vpop.f32.mrf.mxu0  ;;  %v1188_v38 = vpop.f32.mrf.mxu1 }
 0x1bb   : > { %v1553_v41 = vmul.f32 0.1, %v1425_v33  ;;  %v1585_v42 = vmul.f32 0.1, %v1457_v34  ;;  %vm1489_vm12 = vcmp.ge.f32.partialorder %v1425_v33, 0.0  ;;  %vm1521_vm13 = vcmp.ge.f32.partialorder %v1457_v34, 0.0 }
 0x1bc   : > { %2505 = vst [vmem:[%s3153_s29 + $0x70] sm:$0xff] %v2405_v35   ;;  %2521 = vst [vmem:[%s3153_s29 + $0xf0] sm:$0xff] %v2485_v36   ;;  %v1061_v39 = vpop.f32.mrf.mxu0  ;;  %v1189_v40 = vpop.f32.mrf.mxu1 }
 0x1bd   : > { %v1426_v43 = vadd.f32 %v3144_v17, %v1061_v39  ;;  %v1458_v44 = vadd.f32 %v3144_v17, %v1189_v40  ;;  %v1617_v49 = vsel %vm1489_vm12, %v1425_v33, %v1553_v41  ;;  %v1649_v50 = vsel %vm1521_vm13, %v1457_v34, %v1585_v42 }
 0x1be   : > { %v1063_v45 = vpop.f32.mrf.mxu0  ;;  %v1191_v46 = vpop.f32.mrf.mxu1 }
 0x1bf   : > { %vm1490_vm14 = vcmp.ge.f32.partialorder %v1426_v43, 0.0  ;;  %v1554_v47 = vmul.f32 0.1, %v1426_v43  ;;  %vm1522_vm15 = vcmp.ge.f32.partialorder %v1458_v44, 0.0  ;;  %v1586_v48 = vmul.f32 0.1, %v1458_v44 }
 0x1c1   : > { %v1618_v51 = vsel %vm1490_vm14, %v1426_v43, %v1554_v47  ;;  %v1650_v52 = vsel %vm1522_vm15, %v1458_v44, %v1586_v48 }
 0x1c2   : > { %v2410_v17 = vpack.c.bf16 %v1618_v51, %v1617_v49  ;;  %v2490_v53 = vpack.c.bf16 %v1650_v52, %v1649_v50 }
 0x1c4   : > { %2506 = vst [vmem:[%s3153_s29 + $0x78] sm:$0xff] %v2410_v17   ;;  %2522 = vst [vmem:[%s3153_s29 + $0xf8] sm:$0xff] %v2490_v53  }
 0x1c5   : > { %2814 = shalt.err (!%p2811_p3)
}
 0x1c6   : > { %s2815_s26 = scalar_lea.hbm %s3248_s7, 4096  ;;  %s2819_s20 = scalar_lea.hbm %s3302_s3, 16384 }
 0x1c7   : > { %p2816_p5 = scmp.ne.s32.totalorder %s3248_s7, %s2815_s26  ;;  %p2820_p6 = scmp.lt.s32.totalorder %s3248_s7, %s3302_s3 }
 0x1c8   : > { %p2821_p11 = scmp.lt.s32.totalorder %s2819_s20, %s2815_s26 }
 0x1c9   : > { %p2817_p7 = pnand %p2816_p5, %p3313_p4 }
 0x1ca   : > { %p2822_p10 = por %p2821_p11, %p2820_p6 }
 0x1cb   : > { %p2818_p9 = pneg %p2817_p7 }
 0x1cd   : > { %p2823_p1 = pnand %p2822_p10, %p2818_p9 }
 0x1cf   : > { %2826 = shalt.err (!%p2823_p1)
}
 0x1d0   : > { %s2895_s29 = smov 64   ;;  %s2896_s4 = smov 4  }
 0x1d1   : > { %2561 = dma.vmem_to_hbm [thread:$0]  (%p3313_p4), %s3250_s21, 4096, %s3248_s7, %s1972_s15, %s2895_s29, %s2895_s29, %s2896_s4  }
 0x1d2 PF: > { %p2578_p8 = scmp.ge.s32.totalorder %s2885_s17, 2  ;;  %s2001_s5 = sand.u32 1, %s2865_s12  }
 0x1d3   : > { %p3314_p12 = scmp.ne.s32.totalorder %s3307_s23, 0  ;;  %s2002_s6 = scalar_lea.sflag [#allocation5], %s2001_s5 }
 0x1d5   : > { %p2572_p13 = pnand %p2578_p8, %p3314_p12 }
 0x1d7   : > { %p2573_p0 = pneg %p2572_p13 }
 0x1d9   : > { %2860 = dma.done.wait (%p2573_p0), %s2002_s6, 4096  }
 0x1da   : > { %2862 = vsyncadd (%p2573_p0), %s2002_s6, 4294963200  ;;  %s20_s17 = sadd.s32 1, %s2885_s17   ;;  %s3315_s12 = smov %s2869_s13 }
 0x1db   : > { %p17_p2 = scmp.ge.s32.totalorder %s20_s17, 6   ;;  %s3316_s13 = smov %s2873_s14 }
 0x1dc   : > { %s3317_s14 = smov %s3012_s19  ;;  %s3318_s15 = smov %s2881_s16 }
 0x1dd   : > { %s3319_s16 = smov %s3321_s28  ;;  %19 = sbr.rel (!%p17_p2) target bundleno = 7 (0x7), region = 93 }
 0x1e2   :  { %2007 = vsyncpa [#allocation4], 1 }
 0x1e3   :  { %2009 = vsyncpa [#allocation4 + $0x1], 1 }
 0x1e4   :  { %2010 = vsyncpa [#allocation7], 1 }
 0x1e5   :  { %2011 = vsyncpa [#allocation5], 1 }
 0x1e6   :  { %2013 = vsyncpa [#allocation5 + $0x1], 1 }

</bundles_post_ra>
